<compile_context>
chip_gen: v7x
topology: tpu7x:2x2x1
jax: 0.10.0
libtpu: 0.0.40
codegen_flags: <defaults>
</compile_context>

<pallas_src>
import math

import jax
import jax.numpy as jnp
from jax.experimental import pallas as pl
from jax.experimental.pallas import tpu as pltpu

EPS = 1e-5
LANE = 128
_VMEM = pl.BlockSpec(memory_space=pltpu.MemorySpace.VMEM)


def _pad_up(n):
    return ((n + LANE - 1) // LANE) * LANE


# ----------------------------------------------------------------------------
# Torch-equivalent conv primitives (used only at INIT to build dense matrices,
# and by the pure-JAX reference used for the correctness check).
# ----------------------------------------------------------------------------
def _conv_s2(x_nchw, w_oihw):
    """PyTorch Conv2d(kernel=3, stride=2, padding=0)."""
    return jax.lax.conv_general_dilated(
        x_nchw, w_oihw, window_strides=(2, 2), padding="VALID",
        dimension_numbers=("NCHW", "OIHW", "NCHW"))


def _convT_s2(x_nchw, w_iohw, output_padding):
    """PyTorch ConvTranspose2d(kernel=3, stride=2, padding=0, output_padding=op)."""
    w_flip = jnp.transpose(w_iohw[:, :, ::-1, ::-1], (1, 0, 2, 3))   # (Cout,Cin,3,3)
    return jax.lax.conv_general_dilated(
        x_nchw, w_flip, window_strides=(1, 1),
        padding=((2, 2 + output_padding), (2, 2 + output_padding)),
        lhs_dilation=(2, 2),
        dimension_numbers=("NCHW", "OIHW", "NCHW"))


def _conv_s2_to_dense(w_oihw, in_chw):
    """Exact dense (Fin, Fout) matrix for Conv2d(k=3,s=2) on (C,H,W)-flat vectors."""
    cin, h, w = in_chw
    fin = cin * h * w
    eye = jnp.eye(fin, dtype=jnp.float32).reshape(fin, cin, h, w)
    return _conv_s2(eye, w_oihw).reshape(fin, -1)


def _convT_s2_to_dense(w_iohw, in_chw, output_padding):
    """Exact dense (Fin, Fout) matrix for ConvTranspose2d(k=3,s=2)."""
    cin, h, w = in_chw
    fin = cin * h * w
    eye = jnp.eye(fin, dtype=jnp.float32).reshape(fin, cin, h, w)
    return _convT_s2(eye, w_iohw, output_padding).reshape(fin, -1)


# ----------------------------------------------------------------------------
# Parameters: synthetic torch-layout init + all init-time folding
#   conv -> dense matrix, Linear transpose, eval-BN affine fold, 128-lane
#   padding, bf16 weight cast, and full ladder_down constant-fold.
# ----------------------------------------------------------------------------
def build_params(key, input_hw, output_classes):
    H, W = input_hw

    def down(hw):
        return ((hw[0] - 3) // 2 + 1, (hw[1] - 3) // 2 + 1)

    hw0, hw1 = (H, W), down((H, W))
    hw2, hw3 = down(down((H, W))), down(down(down((H, W))))
    hidden = 128
    conv_out = 16 * hw3[0] * hw3[1]

    keys = iter(jax.random.split(key, 128))          # FIX: 65 draws needed

    def nrm(shape, scale=0.1):
        return (scale * jax.random.normal(next(keys), shape)).astype(jnp.float32)

    bn_scale = 1.0 / math.sqrt(1.0 + EPS)             # fresh running stats, eval mode

    def comb9(shape):
        # order: b0, b1, xw0, xw1, uw0, uw1, cw0, cw1, sw  (torch init +/- jitter)
        return [nrm(shape), nrm(shape), 1.0 + nrm(shape), 1.0 + nrm(shape),
                nrm(shape), nrm(shape), nrm(shape), nrm(shape), 1.0 + nrm(shape)]

    raw = {
        "bn_scale": bn_scale,
        "enc_conv": [{"w": nrm((co, ci, 3, 3)), "b": nrm((co,))}
                     for ci, co in [(1, 4), (4, 8), (8, 16)]],
        "enc_deep": [{"w": nrm((hidden, conv_out)), "b": nrm((hidden,))},
                     {"w": nrm((output_classes, hidden)), "b": nrm((output_classes,))}],
        "dec_deep": [{"w": nrm((hidden, output_classes)), "b": nrm((hidden,)),
                      "comb": comb9((hidden,))},
                     {"w": nrm((conv_out, hidden)), "b": nrm((conv_out,)),
                      "comb": comb9((conv_out,))}],
        "dec_conv": [],
    }
    for ci, co, in_hw, out_hw in [(16, 8, hw3, hw2), (8, 4, hw2, hw1), (4, 1, hw1, hw0)]:
        op = 0 if 2 * in_hw[0] + 1 == out_hw[0] else 1
        raw["dec_conv"].append({"w": nrm((ci, co, 3, 3)), "b": nrm((co,)),
                                "comb": comb9(out_hw), "in_chw": (ci, *in_hw),
                                "out_hw": out_hw, "cout": co, "op": op})

    # -------- encoder: conv -> dense matrices, Linear -> transposed (f32) -----
    shapes = ((1, *hw0), (4, *hw1), (8, *hw2), (16, *hw3))
    feats = [c * h * w for (c, h, w) in shapes]
    dims = feats + [hidden, output_classes]           # unpadded layer output dims
    pads = [_pad_up(d) for d in dims]

    enc_w, enc_b = [], []
    chw = shapes[0]
    for p, out_chw in zip(raw["enc_conv"], shapes[1:]):
        enc_w.append(_conv_s2_to_dense(p["w"], chw))
        enc_b.append(jnp.repeat(p["b"], out_chw[1] * out_chw[2]).reshape(1, -1))
        chw = out_chw
    for p in raw["enc_deep"]:
        enc_w.append(p["w"].T)
        enc_b.append(p["b"].reshape(1, -1))

    # -------- corrupted branch (eval: all-zero input) -> parameter-only consts
    c0 = jnp.zeros((1, feats[0]), jnp.float32)
    c1 = jax.nn.relu(enc_b[0])                          # relu(conv(0) + b)
    c2 = jax.nn.relu(c1 @ enc_w[1] + enc_b[1])
    c3 = jax.nn.relu(c2 @ enc_w[2] + enc_b[2])
    d1 = jnp.tanh(c3 @ enc_w[3] + enc_b[3])
    d2 = d1 @ enc_w[4] + enc_b[4]

    # -------- decoders: fold eval-BN affine, then fold the WHOLE ladder_down --
    def fold_affine(w_dense, b_full):
        return w_dense * bn_scale, (b_full * bn_scale).reshape(1, -1)

    dec = []
    for p, cl in zip(raw["dec_deep"], (d1, c3)):        # Linear + BatchNorm1d (eval)
        wf, bf = fold_affine(p["w"].T, p["b"])
        comb = [c.reshape(1, -1) for c in p["comb"]]
        dec.append((wf, bf, comb, cl))
    for p, cl in zip(raw["dec_conv"], (c2, c1, c0)):    # ConvT + BatchNorm2d (eval)
        wd = _convT_s2_to_dense(p["w"], p["in_chw"], p["op"])
        hwsz = p["out_hw"][0] * p["out_hw"][1]
        wf, bf = fold_affine(wd, jnp.repeat(p["b"], hwsz))
        # per-(h,w) params broadcast over channels -> per-feature (C,H,W) order
        comb = [jnp.tile(c.reshape(-1), (p["cout"],)).reshape(1, -1) for c in p["comb"]]
        dec.append((wf, bf, comb, cl))

    def combinator(u, cl, comb):
        b0, b1, xw0, xw1, uw0, uw1, cw0, cw1, sw = comb
        gate = b1 + xw1 * cl + uw1 * u + cw1 * cl * u
        return b0 + xw0 * cl + uw0 * u + cw0 * cl * u + sw * jax.nn.sigmoid(gate)

    cur, downs = d2, []
    for wf, bf, comb, cl in dec:
        cur = combinator(cur @ wf + bf, cl, comb)
        downs.append(cur)
    ld1, ld2, cd1, cd2, cd3 = downs

    down_consts = [                                     # torch return order, no batch
        cd3.reshape(shapes[0]), cd2.reshape(shapes[1]), cd1.reshape(shapes[2]),
        ld2.reshape(shapes[3]), ld1.reshape(-1), d2.reshape(-1),
    ]

    # -------- pad encoder weights to 128-lane multiples, cast weights to bf16 -
    def pad2(a, r, c):
        return jnp.pad(a, ((0, r - a.shape[0]), (0, c - a.shape[1])))

    enc_w_p = [pad2(w, pin, pout).astype(jnp.bfloat16)
               for w, pin, pout in zip(enc_w, pads[:-1], pads[1:])]
    enc_b_p = [pad2(b, 1, pout) for b, pout in zip(enc_b, pads[1:])]
    tail_w = pad2(jnp.full((1, feats[0]), bn_scale, jnp.float32), 1, pads[0])
    tail_b = jnp.zeros((1, pads[0]), jnp.float32)

    fused = {"tail_w": tail_w, "tail_b": tail_b,
             "enc_w": enc_w_p, "enc_b": enc_b_p, "down": down_consts}
    return {"fused": fused, "shapes": shapes, "dims": dims, "pads": pads, "raw": raw}


# ----------------------------------------------------------------------------
# Forward: one grid=() pallas_call computing the clean-encoder (ladder_up)
# chain into a single lane-dense output slab; ladder_down is the broadcast of
# the init-time constants.
# ----------------------------------------------------------------------------
def make_forward(P):
    shapes, dims, pads, A = P["shapes"], P["dims"], P["pads"], P["fused"]

    offs, o = [], 0
    for d in pads:
        offs.append(o)
        o += d
    total = o                                           # 1792 = 14 * 128

    def kernel(x_ref, tw_ref, tb_ref,
               w1_ref, b1_ref, w2_ref, b2_ref, w3_ref, b3_ref,
               w4_ref, b4_ref, w5_ref, b5_ref, out_ref):
        def dense(x, w_ref, b_ref):
            # bf16 @ bf16 on the MXU, f32 accumulate; bias add in f32.
            return jnp.dot(x.astype(jnp.bfloat16), w_ref[...],
                           preferred_element_type=jnp.float32) + b_ref[...]

        u0 = x_ref[...] * tw_ref[...] + tb_ref[...]     # eval BatchNorm2d(1)
        u1 = jnp.maximum(dense(u0, w1_ref, b1_ref), 0.0)
        u2 = jnp.maximum(dense(u1, w2_ref, b2_ref), 0.0)
        u3 = jnp.maximum(dense(u2, w3_ref, b3_ref), 0.0)
        u4 = jnp.tanh(dense(u3, w4_ref, b4_ref))
        u5 = dense(u4, w5_ref, b5_ref)
        for off, width, u in zip(offs, pads, (u0, u1, u2, u3, u4, u5)):
            out_ref[:, off:off + width] = u             # 128-aligned lane-dense stores

    def _fwd(x_nchw, A):
        bsz = x_nchw.shape[0]
        x_flat = x_nchw.reshape(bsz, -1)                # torch flatten(start_dim=1)
        x_pad = jnp.pad(x_flat, ((0, 0), (0, pads[0] - x_flat.shape[1])))

        inputs = [x_pad, A["tail_w"], A["tail_b"]]
        for w, b in zip(A["enc_w"], A["enc_b"]):
            inputs.extend((w, b))

        slab = pl.pallas_call(
            kernel,
            out_shape=jax.ShapeDtypeStruct((bsz, total), jnp.float32),
            in_specs=[_VMEM] * len(inputs),
            out_specs=_VMEM,
            compiler_params=pltpu.CompilerParams(vmem_limit_bytes=8 * 1024 * 1024),
        )(*inputs)

        cols = [slab[:, off:off + d] for off, d in zip(offs, dims)]
        ladder_up = [cols[0].reshape(bsz, *shapes[0]),
                     cols[1].reshape(bsz, *shapes[1]),
                     cols[2].reshape(bsz, *shapes[2]),
                     cols[3].reshape(bsz, *shapes[3]),
                     cols[4], cols[5]]
        # eval-mode ladder_down is batch-independent -> broadcast the constants
        ladder_down = [jnp.broadcast_to(c[None], (bsz, *c.shape)) for c in A["down"]]
        return ladder_up, ladder_down

    jitted = jax.jit(_fwd)
    return lambda x: jitted(x, A)


# ----------------------------------------------------------------------------
# Pure-JAX reference (torch-layout weights, eval-mode semantics), computed with
# lax convolutions (independent of the dense-matrix folding used above).
# ----------------------------------------------------------------------------
def reference_forward(x, raw):
    bn = lambda u: u * raw["bn_scale"]
    bsz = x.shape[0]

    def enc_conv(h, p):
        return jax.nn.relu(_conv_s2(h, p["w"]) + p["b"][None, :, None, None])

    def enc_deep(h, p, act):
        h = h @ p["w"].T + p["b"]
        return jnp.tanh(h) if act else h

    u0 = bn(x)
    u1 = enc_conv(u0, raw["enc_conv"][0])
    u2 = enc_conv(u1, raw["enc_conv"][1])
    u3 = enc_conv(u2, raw["enc_conv"][2])
    u4 = enc_deep(u3.reshape(bsz, -1), raw["enc_deep"][0], True)
    u5 = enc_deep(u4, raw["enc_deep"][1], False)
    ladder_up = [u0, u1, u2, u3, u4, u5]

    c0 = jnp.zeros_like(x)                      # eval: corrupted path starts at zeros
    c1 = enc_conv(c0, raw["enc_conv"][0])
    c2 = enc_conv(c1, raw["enc_conv"][1])
    c3 = enc_conv(c2, raw["enc_conv"][2])
    fc3 = c3.reshape(bsz, -1)
    d1 = enc_deep(fc3, raw["enc_deep"][0], True)
    d2 = enc_deep(d1, raw["enc_deep"][1], False)

    def combinator(u, cl, cp):
        b0, b1, xw0, xw1, uw0, uw1, cw0, cw1, sw = cp
        gate = b1 + xw1 * cl + uw1 * u + cw1 * cl * u
        return b0 + xw0 * cl + uw0 * u + cw0 * cl * u + sw * jax.nn.sigmoid(gate)

    dd = raw["dec_deep"]
    ld1 = combinator(bn(d2 @ dd[0]["w"].T + dd[0]["b"]), d1, dd[0]["comb"])
    ld2f = combinator(bn(ld1 @ dd[1]["w"].T + dd[1]["b"]), fc3, dd[1]["comb"])
    ld2 = ld2f.reshape(c3.shape)

    cur, downs = ld2, []
    for p, cl in zip(raw["dec_conv"], (c2, c1, c0)):
        u = bn(_convT_s2(cur, p["w"], p["op"]) + p["b"][None, :, None, None])
        cp = [c[None, None, :, :] for c in p["comb"]]
        cur = combinator(u, cl, cp)
        downs.append(cur)

    ladder_down = [downs[2], downs[1], downs[0], ld2, ld1, d2]
    return ladder_up, ladder_down


# ----------------------------------------------------------------------------
if __name__ == "__main__":
    key = jax.random.PRNGKey(0)
    kx, kp = jax.random.split(key)

    H, W = 23, 23                         # spatial chain: 23 -> 11 -> 5 -> 2
    OUTPUT_CLASSES = 10
    P = build_params(kp, (H, W), OUTPUT_CLASSES)
    forward = make_forward(P)

    x = jax.random.normal(kx, (2, 1, H, W), dtype=jnp.float32)

    ladder_up, ladder_down = forward(x)
    jax.block_until_ready((ladder_up, ladder_down))

    # shape checks (match the torch module's returned lists)
    assert ladder_up[0].shape == (2, 1, H, W)
    assert ladder_up[3].shape == (2, 16, 2, 2)
    assert ladder_up[-1].shape == (2, OUTPUT_CLASSES)
    assert ladder_down[0].shape == (2, 1, H, W)
    assert ladder_down[2].shape == (2, 8, 5, 5)
    assert ladder_down[-1].shape == (2, OUTPUT_CLASSES)

    # numerical check against the pure-JAX reference of the eval-mode forward
    # (bf16 weights in the kernel -> 5e-2 absolute tolerance)
    ref_up, ref_down = reference_forward(x, P["raw"])
    for got, want in zip(list(ladder_up) + list(ladder_down), ref_up + ref_down):
        assert got.shape == want.shape
        assert bool(jnp.all(jnp.isfinite(got)))
        err = float(jnp.max(jnp.abs(got - want)))
        assert err < 5e-2, err

    print("KERNEL_OK")
</pallas_src>

<mosaic_0001>
module attributes {stable_mosaic.version = 11 : i64} {
  func.func @kernel(%arg0: memref<2x640xf32, #tpu.memory_space<vmem>>, %arg1: memref<1x640xf32, #tpu.memory_space<vmem>>, %arg2: memref<1x640xf32, #tpu.memory_space<vmem>>, %arg3: memref<640x512xbf16, #tpu.memory_space<vmem>>, %arg4: memref<1x512xf32, #tpu.memory_space<vmem>>, %arg5: memref<512x256xbf16, #tpu.memory_space<vmem>>, %arg6: memref<1x256xf32, #tpu.memory_space<vmem>>, %arg7: memref<256x128xbf16, #tpu.memory_space<vmem>>, %arg8: memref<1x128xf32, #tpu.memory_space<vmem>>, %arg9: memref<128x128xbf16, #tpu.memory_space<vmem>>, %arg10: memref<1x128xf32, #tpu.memory_space<vmem>>, %arg11: memref<128x128xbf16, #tpu.memory_space<vmem>>, %arg12: memref<1x128xf32, #tpu.memory_space<vmem>>, %arg13: memref<2x1792xf32, #tpu.memory_space<vmem>>) attributes {dimension_semantics = [], scalar_prefetch = 0 : i64, scratch_operands = 0 : i64, tpu.core_type = #tpu.core_type<tc>} {
    %c0 = arith.constant 0 : index
    %c0_0 = arith.constant 0 : index
    %0 = vector.load %arg0[%c0, %c0_0] : memref<2x640xf32, #tpu.memory_space<vmem>>, vector<2x640xf32>
    %c0_1 = arith.constant 0 : index
    %c0_2 = arith.constant 0 : index
    %1 = vector.load %arg1[%c0_1, %c0_2] : memref<1x640xf32, #tpu.memory_space<vmem>>, vector<1x640xf32>
    %2 = vector.broadcast %1 : vector<1x640xf32> to vector<2x640xf32>
    %3 = arith.mulf %0, %2 : vector<2x640xf32>
    %c0_3 = arith.constant 0 : index
    %c0_4 = arith.constant 0 : index
    %4 = vector.load %arg2[%c0_3, %c0_4] : memref<1x640xf32, #tpu.memory_space<vmem>>, vector<1x640xf32>
    %5 = vector.broadcast %4 : vector<1x640xf32> to vector<2x640xf32>
    %6 = arith.addf %3, %5 : vector<2x640xf32>
    %7 = arith.truncf %6 : vector<2x640xf32> to vector<2x640xbf16>
    %c0_5 = arith.constant 0 : index
    %c0_6 = arith.constant 0 : index
    %8 = vector.load %arg3[%c0_5, %c0_6] : memref<640x512xbf16, #tpu.memory_space<vmem>>, vector<640x512xbf16>
    %cst = arith.constant dense<0.000000e+00> : vector<2x512xf32>
    %9 = tpu.matmul %7, %8, %cst {dimension_numbers = #tpu.dot_dimension_numbers<[1], [0], [0], [1], [0, 0, 1, 1], [], []>} : vector<2x640xbf16>, vector<640x512xbf16>, vector<2x512xf32> -> vector<2x512xf32>
    %c0_7 = arith.constant 0 : index
    %c0_8 = arith.constant 0 : index
    %10 = vector.load %arg4[%c0_7, %c0_8] : memref<1x512xf32, #tpu.memory_space<vmem>>, vector<1x512xf32>
    %11 = vector.broadcast %10 : vector<1x512xf32> to vector<2x512xf32>
    %12 = arith.addf %9, %11 : vector<2x512xf32>
    %cst_9 = arith.constant 0.000000e+00 : f32
    %13 = vector.broadcast %cst_9 : f32 to vector<2x512xf32>
    %14 = arith.maximumf %12, %13 : vector<2x512xf32>
    %15 = arith.truncf %14 : vector<2x512xf32> to vector<2x512xbf16>
    %c0_10 = arith.constant 0 : index
    %c0_11 = arith.constant 0 : index
    %16 = vector.load %arg5[%c0_10, %c0_11] : memref<512x256xbf16, #tpu.memory_space<vmem>>, vector<512x256xbf16>
    %cst_12 = arith.constant dense<0.000000e+00> : vector<2x256xf32>
    %17 = tpu.matmul %15, %16, %cst_12 {dimension_numbers = #tpu.dot_dimension_numbers<[1], [0], [0], [1], [0, 0, 1, 1], [], []>} : vector<2x512xbf16>, vector<512x256xbf16>, vector<2x256xf32> -> vector<2x256xf32>
    %c0_13 = arith.constant 0 : index
    %c0_14 = arith.constant 0 : index
    %18 = vector.load %arg6[%c0_13, %c0_14] : memref<1x256xf32, #tpu.memory_space<vmem>>, vector<1x256xf32>
    %19 = vector.broadcast %18 : vector<1x256xf32> to vector<2x256xf32>
    %20 = arith.addf %17, %19 : vector<2x256xf32>
    %cst_15 = arith.constant 0.000000e+00 : f32
    %21 = vector.broadcast %cst_15 : f32 to vector<2x256xf32>
    %22 = arith.maximumf %20, %21 : vector<2x256xf32>
    %23 = arith.truncf %22 : vector<2x256xf32> to vector<2x256xbf16>
    %c0_16 = arith.constant 0 : index
    %c0_17 = arith.constant 0 : index
    %24 = vector.load %arg7[%c0_16, %c0_17] : memref<256x128xbf16, #tpu.memory_space<vmem>>, vector<256x128xbf16>
    %cst_18 = arith.constant dense<0.000000e+00> : vector<2x128xf32>
    %25 = tpu.matmul %23, %24, %cst_18 {dimension_numbers = #tpu.dot_dimension_numbers<[1], [0], [0], [1], [0, 0, 1, 1], [], []>} : vector<2x256xbf16>, vector<256x128xbf16>, vector<2x128xf32> -> vector<2x128xf32>
    %c0_19 = arith.constant 0 : index
    %c0_20 = arith.constant 0 : index
    %26 = vector.load %arg8[%c0_19, %c0_20] : memref<1x128xf32, #tpu.memory_space<vmem>>, vector<1x128xf32>
    %27 = vector.broadcast %26 : vector<1x128xf32> to vector<2x128xf32>
    %28 = arith.addf %25, %27 : vector<2x128xf32>
    %cst_21 = arith.constant 0.000000e+00 : f32
    %29 = vector.broadcast %cst_21 : f32 to vector<2x128xf32>
    %30 = arith.maximumf %28, %29 : vector<2x128xf32>
    %31 = arith.truncf %30 : vector<2x128xf32> to vector<2x128xbf16>
    %c0_22 = arith.constant 0 : index
    %c0_23 = arith.constant 0 : index
    %32 = vector.load %arg9[%c0_22, %c0_23] : memref<128x128xbf16, #tpu.memory_space<vmem>>, vector<128x128xbf16>
    %cst_24 = arith.constant dense<0.000000e+00> : vector<2x128xf32>
    %33 = tpu.matmul %31, %32, %cst_24 {dimension_numbers = #tpu.dot_dimension_numbers<[1], [0], [0], [1], [0, 0, 1, 1], [], []>} : vector<2x128xbf16>, vector<128x128xbf16>, vector<2x128xf32> -> vector<2x128xf32>
    %c0_25 = arith.constant 0 : index
    %c0_26 = arith.constant 0 : index
    %34 = vector.load %arg10[%c0_25, %c0_26] : memref<1x128xf32, #tpu.memory_space<vmem>>, vector<1x128xf32>
    %35 = vector.broadcast %34 : vector<1x128xf32> to vector<2x128xf32>
    %36 = arith.addf %33, %35 : vector<2x128xf32>
    %37 = math.tanh %36 : vector<2x128xf32>
    %38 = arith.truncf %37 : vector<2x128xf32> to vector<2x128xbf16>
    %c0_27 = arith.constant 0 : index
    %c0_28 = arith.constant 0 : index
    %39 = vector.load %arg11[%c0_27, %c0_28] : memref<128x128xbf16, #tpu.memory_space<vmem>>, vector<128x128xbf16>
    %cst_29 = arith.constant dense<0.000000e+00> : vector<2x128xf32>
    %40 = tpu.matmul %38, %39, %cst_29 {dimension_numbers = #tpu.dot_dimension_numbers<[1], [0], [0], [1], [0, 0, 1, 1], [], []>} : vector<2x128xbf16>, vector<128x128xbf16>, vector<2x128xf32> -> vector<2x128xf32>
    %c0_30 = arith.constant 0 : index
    %c0_31 = arith.constant 0 : index
    %41 = vector.load %arg12[%c0_30, %c0_31] : memref<1x128xf32, #tpu.memory_space<vmem>>, vector<1x128xf32>
    %42 = vector.broadcast %41 : vector<1x128xf32> to vector<2x128xf32>
    %43 = arith.addf %40, %42 : vector<2x128xf32>
    %c0_32 = arith.constant 0 : index
    %c0_33 = arith.constant 0 : index
    %44 = vector.load %arg13[%c0_32, %c0_33] : memref<2x1792xf32, #tpu.memory_space<vmem>>, vector<2x640xf32>
    tpu.vector_store %arg13[%c0_32, %c0_33], %6 {strides = array<i32>} : memref<2x1792xf32, #tpu.memory_space<vmem>>, vector<2x640xf32>,
    %c0_34 = arith.constant 0 : index
    %c640 = arith.constant 640 : index
    %45 = vector.load %arg13[%c0_34, %c640] : memref<2x1792xf32, #tpu.memory_space<vmem>>, vector<2x512xf32>
    tpu.vector_store %arg13[%c0_34, %c640], %14 {strides = array<i32>} : memref<2x1792xf32, #tpu.memory_space<vmem>>, vector<2x512xf32>,
    %c0_35 = arith.constant 0 : index
    %c1152 = arith.constant 1152 : index
    %46 = vector.load %arg13[%c0_35, %c1152] : memref<2x1792xf32, #tpu.memory_space<vmem>>, vector<2x256xf32>
    tpu.vector_store %arg13[%c0_35, %c1152], %22 {strides = array<i32>} : memref<2x1792xf32, #tpu.memory_space<vmem>>, vector<2x256xf32>,
    %c0_36 = arith.constant 0 : index
    %c1408 = arith.constant 1408 : index
    %47 = vector.load %arg13[%c0_36, %c1408] : memref<2x1792xf32, #tpu.memory_space<vmem>>, vector<2x128xf32>
    tpu.vector_store %arg13[%c0_36, %c1408], %30 {strides = array<i32>} : memref<2x1792xf32, #tpu.memory_space<vmem>>, vector<2x128xf32>,
    %c0_37 = arith.constant 0 : index
    %c1536 = arith.constant 1536 : index
    %48 = vector.load %arg13[%c0_37, %c1536] : memref<2x1792xf32, #tpu.memory_space<vmem>>, vector<2x128xf32>
    tpu.vector_store %arg13[%c0_37, %c1536], %37 {strides = array<i32>} : memref<2x1792xf32, #tpu.memory_space<vmem>>, vector<2x128xf32>,
    %c0_38 = arith.constant 0 : index
    %c1664 = arith.constant 1664 : index
    %49 = vector.load %arg13[%c0_38, %c1664] : memref<2x1792xf32, #tpu.memory_space<vmem>>, vector<2x128xf32>
    tpu.vector_store %arg13[%c0_38, %c1664], %43 {strides = array<i32>} : memref<2x1792xf32, #tpu.memory_space<vmem>>, vector<2x128xf32>,
    return
  }
}

</mosaic_0001>

<bundles_post_ra>
// kernel: _fwd.1
= control target key start
LH: loop header
LB: loop body
LE: loop exit
PB: predicated region body
PF: predicated region fallthrough
CT: control target
= control target key end

     0   :  { %18 = vsyncpa [#allocation3], 0  ;;  %s3836_s0 = inlined_call_operand.vmem [shape: f32[2,640], index: 0, kind: input, shape index: {}]   ;;  %s3837_s1 = inlined_call_operand.hbm [shape: f32[1,640], index: 1, kind: input, shape index: {}]   ;;  %s3838_s2 = inlined_call_operand.hbm [shape: f32[1,640], index: 2, kind: input, shape index: {}]   ;;  %s3839_s3 = inlined_call_operand.hbm [shape: bf16[640,512], index: 3, kind: input, shape index: {}]   ;;  %s3840_s4 = inlined_call_operand.vmem [shape: f32[1,512], index: 4, kind: input, shape index: {}]   ;;  %s3841_s5 = inlined_call_operand.hbm [shape: bf16[512,256], index: 5, kind: input, shape index: {}]   ;;  %s3842_s6 = inlined_call_operand.hbm [shape: f32[1,256], index: 6, kind: input, shape index: {}]   ;;  %s3843_s7 = inlined_call_operand.vmem [shape: bf16[256,128], index: 7, kind: input, shape index: {}]   ;;  %s3844_s8 = inlined_call_operand.hbm [shape: f32[1,128], index: 8, kind: input, shape index: {}]   ;;  %s3845_s9 = inlined_call_operand.vmem [shape: bf16[128,128], index: 9, kind: input, shape index: {}]   ;;  %s3846_s10 = inlined_call_operand.hbm [shape: f32[1,128], index: 10, kind: input, shape index: {}]   ;;  %s3847_s11 = inlined_call_operand.hbm [shape: bf16[128,128], index: 11, kind: input, shape index: {}]   ;;  %s3848_s12 = inlined_call_operand.hbm [shape: f32[1,128], index: 12, kind: input, shape index: {}]   ;;  %s3849_s13 = inlined_call_operand.vmem [shape: f32[2,1792], index: 13, kind: output, shape index: {}]  }
   0x1   :  { %19 = vsyncpa [#allocation5], 0 }
   0x2   :  { %20 = vsyncpa [#allocation8], 0 }
   0x3   :  { %21 = vsyncpa [#allocation11], 0 }
   0x4   :  { %22 = vsyncpa [#allocation14], 0  ;;  %s3424_s25 = smov [#allocation4]   ;;  %s3425_s27 = smov [#allocation7]  }
   0x5   :  { %s41_s26 = sshll.u32 %s3424_s25, 4  ;;  %s64_s28 = sshll.u32 %s3425_s27, 4  ;;  %s42_s26 = int_to_ptr.vmem [resolvable:$true] %s41_s26  ;;  %s3513_s28 = int_to_ptr.vmem [resolvable:$true] %s64_s28 }
   0x6   :  { %s3216_s14 = scalar_lea.hbm %s3838_s2, 80 }
   0x7   :  { %p3217_p0 = scmp.ne.s32.totalorder %s3838_s2, %s3216_s14  ;;  %p3220_p1 = scmp.lt.u32.totalorder %s3216_s14, %s3838_s2 }
   0x9   :  { %p3222_p2 = pnand %p3220_p1, %p3217_p0 }
   0xb   :  { %3225 = shalt.err (!%p3222_p2)
}
   0xc   :  { %s3226_s19 = scalar_lea.vmem %s42_s26, 80  ;;  %s3230_s20 = scalar_lea.vmem %s42_s26, 96 }
   0xd   :  { %p3227_p3 = scmp.ne.s32.totalorder %s42_s26, %s3226_s19  ;;  %p3231_p4 = scmp.lt.s32.totalorder %s42_s26, %s42_s26 }
   0xe   :  { %p3232_p5 = scmp.lt.s32.totalorder %s3230_s20, %s3226_s19 }
  0x10   :  { %p3233_p6 = por %p3232_p5, %p3231_p4 }
  0x12   :  { %p3234_p7 = pnand %p3233_p6, %p3227_p3 }
  0x14   :  { %3237 = shalt.err (!%p3234_p7)
}
  0x15   :  { %44 = dma.hbm_to_vmem [thread:$0]  %s3838_s2, 80, %s42_s26, [#allocation5]  }
  0x16   :  { %s3238_s25 = scalar_lea.hbm %s3841_s5, 8192 }
  0x17   :  { %p3239_p8 = scmp.ne.s32.totalorder %s3841_s5, %s3238_s25  ;;  %p3242_p9 = scmp.lt.u32.totalorder %s3238_s25, %s3841_s5 }
  0x19   :  { %p3244_p10 = pnand %p3242_p9, %p3239_p8 }
  0x1b   :  { %3247 = shalt.err (!%p3244_p10)
}
  0x1c   :  { %s3248_s15 = scalar_lea.vmem %s3513_s28, 8192  ;;  %p3253_p12 = scmp.lt.s32.totalorder %s3513_s28, %s3513_s28 }
  0x1d   :  { %p3249_p11 = scmp.ne.s32.totalorder %s3513_s28, %s3248_s15  ;;  %p3254_p13 = scmp.lt.s32.totalorder %s3248_s15, %s3248_s15 }
  0x1f   :  { %p3255_p0 = por %p3254_p13, %p3253_p12 }
  0x21   :  { %p3256_p1 = pnand %p3255_p0, %p3249_p11 }
  0x23   :  { %3259 = shalt.err (!%p3256_p1)
}
  0x24   :  { %s3426_s2 = smov 128   ;;  %s3427_s26 = smov 8  }
  0x25   :  { %70 = dma.hbm_to_vmem [thread:$0]  %s3841_s5, 8192, %s3513_s28, [#allocation8], %s3426_s2, %s3426_s2, %s3427_s26  }
  0x26   :  { %s3428_s18 = smov [#allocation10]   ;;  %s3429_s20 = smov [#allocation13]  }
  0x27   :  { %s89_s19 = sshll.u32 %s3428_s18, 4  ;;  %s110_s21 = sshll.u32 %s3429_s20, 4  ;;  %s90_s19 = int_to_ptr.vmem [resolvable:$true] %s89_s19  ;;  %s3544_s21 = int_to_ptr.vmem [resolvable:$true] %s110_s21 }
  0x28   :  { %s3260_s24 = scalar_lea.hbm %s3844_s8, 16 }
  0x29   :  { %p3261_p2 = scmp.ne.s32.totalorder %s3844_s8, %s3260_s24  ;;  %p3264_p3 = scmp.lt.u32.totalorder %s3260_s24, %s3844_s8 }
  0x2b   :  { %p3266_p4 = pnand %p3264_p3, %p3261_p2 }
  0x2d   :  { %3269 = shalt.err (!%p3266_p4)
}
  0x2e   :  { %s3270_s5 = scalar_lea.vmem %s90_s19, 16  ;;  %s3274_s28 = scalar_lea.vmem %s90_s19, 32 }
  0x2f   :  { %p3271_p5 = scmp.ne.s32.totalorder %s90_s19, %s3270_s5  ;;  %p3275_p6 = scmp.lt.s32.totalorder %s90_s19, %s90_s19 }
  0x30   :  { %p3276_p7 = scmp.lt.s32.totalorder %s3274_s28, %s3270_s5 }
  0x32   :  { %p3277_p8 = por %p3276_p7, %p3275_p6 }
  0x34   :  { %p3278_p9 = pnand %p3277_p8, %p3271_p5 }
  0x36   :  { %3281 = shalt.err (!%p3278_p9)
}
  0x37   :  { %92 = dma.hbm_to_vmem [thread:$0]  %s3844_s8, 16, %s90_s19, [#allocation11]  }
  0x38   :  { %s3282_s16 = scalar_lea.hbm %s3847_s11, 1024 }
  0x39   :  { %p3283_p10 = scmp.ne.s32.totalorder %s3847_s11, %s3282_s16  ;;  %p3286_p11 = scmp.lt.u32.totalorder %s3282_s16, %s3847_s11 }
  0x3b   :  { %p3288_p12 = pnand %p3286_p11, %p3283_p10 }
  0x3d   :  { %3291 = shalt.err (!%p3288_p12)
}
  0x3e   :  { %s3292_s23 = scalar_lea.vmem %s3544_s21, 1024  ;;  %p3297_p0 = scmp.lt.s32.totalorder %s3544_s21, %s3544_s21 }
  0x3f   :  { %p3293_p13 = scmp.ne.s32.totalorder %s3544_s21, %s3292_s23  ;;  %p3298_p1 = scmp.lt.s32.totalorder %s3292_s23, %s3292_s23 }
  0x41   :  { %p3299_p2 = por %p3298_p1, %p3297_p0 }
  0x43   :  { %p3300_p3 = pnand %p3299_p2, %p3293_p13 }
  0x45   :  { %3303 = shalt.err (!%p3300_p3)
}
  0x46   :  { %s3430_s8 = smov 64   ;;  %s3431_s19 = smov 4  }
  0x47   :  { %116 = dma.hbm_to_vmem [thread:$0]  %s3847_s11, 1024, %s3544_s21, [#allocation14], %s3430_s8, %s3430_s8, %s3431_s19  }
  0x48   :  { %s3432_s27 = smov [#allocation2]   ;;  %s3433_s30 = smov [#allocation6]  }
  0x49   :  { %s31_s29 = sshll.u32 %s3432_s27, 4  ;;  %s50_s5 = sshll.u32 %s3433_s30, 4  ;;  %s32_s29 = int_to_ptr.vmem [resolvable:$true] %s31_s29  ;;  %s3575_s5 = int_to_ptr.vmem [resolvable:$true] %s50_s5 }
  0x4a   :  { %s3304_s15 = scalar_lea.hbm %s3837_s1, 80 }
  0x4b   :  { %p3305_p4 = scmp.ne.s32.totalorder %s3837_s1, %s3304_s15  ;;  %p3308_p5 = scmp.lt.u32.totalorder %s3304_s15, %s3837_s1 }
  0x4d   :  { %p3310_p6 = pnand %p3308_p5, %p3305_p4 }
  0x4f   :  { %3313 = shalt.err (!%p3310_p6)
}
  0x50   :  { %s3314_s11 = scalar_lea.vmem %s32_s29, 80  ;;  %s3318_s21 = scalar_lea.vmem %s32_s29, 96 }
  0x51   :  { %p3315_p7 = scmp.ne.s32.totalorder %s32_s29, %s3314_s11  ;;  %p3319_p8 = scmp.lt.s32.totalorder %s32_s29, %s32_s29 }
  0x52   :  { %p3320_p9 = scmp.lt.s32.totalorder %s3318_s21, %s3314_s11 }
  0x54   :  { %p3321_p10 = por %p3320_p9, %p3319_p8 }
  0x56   :  { %p3322_p11 = pnand %p3321_p10, %p3315_p7 }
  0x58   :  { %3325 = shalt.err (!%p3322_p11)
}
  0x59   :  { %34 = dma.hbm_to_vmem [thread:$0]  %s3837_s1, 80, %s32_s29, [#allocation3]  }
  0x5a   :  { %s3326_s8 = scalar_lea.hbm %s3839_s3, 20480 }
  0x5b   :  { %p3327_p12 = scmp.ne.s32.totalorder %s3839_s3, %s3326_s8  ;;  %p3330_p13 = scmp.lt.u32.totalorder %s3326_s8, %s3839_s3 }
  0x5d   :  { %p3332_p0 = pnand %p3330_p13, %p3327_p12 }
  0x5f   :  { %3335 = shalt.err (!%p3332_p0)
}
  0x60   :  { %s3336_s30 = scalar_lea.vmem %s3575_s5, 20480  ;;  %p3341_p2 = scmp.lt.s32.totalorder %s3575_s5, %s3575_s5 }
  0x61   :  { %p3337_p1 = scmp.ne.s32.totalorder %s3575_s5, %s3336_s30  ;;  %p3342_p3 = scmp.lt.s32.totalorder %s3336_s30, %s3336_s30 }
  0x63   :  { %p3343_p4 = por %p3342_p3, %p3341_p2 }
  0x65   :  { %p3344_p5 = pnand %p3343_p4, %p3337_p1 }
  0x67   :  { %3347 = shalt.err (!%p3344_p5)
}
  0x68   :  { %s3434_s1 = smov 256   ;;  %s3435_s29 = smov 16  }
  0x69   :  { %56 = dma.hbm_to_vmem [thread:$0]  %s3839_s3, 20480, %s3575_s5, [#allocation5], %s3434_s1, %s3434_s1, %s3435_s29  }
  0x6a   :  { %s3436_s15 = smov [#allocation9]   ;;  %s3437_s26 = smov [#allocation12]  }
  0x6b   :  { %s77_s2 = sshll.u32 %s3436_s15, 4  ;;  %s101_s16 = sshll.u32 %s3437_s26, 4  ;;  %s78_s2 = int_to_ptr.vmem [resolvable:$true] %s77_s2  ;;  %s102_s16 = int_to_ptr.vmem [resolvable:$true] %s101_s16 }
  0x6c   :  { %s3348_s21 = scalar_lea.hbm %s3842_s6, 32 }
  0x6d   :  { %p3349_p6 = scmp.ne.s32.totalorder %s3842_s6, %s3348_s21  ;;  %p3352_p7 = scmp.lt.u32.totalorder %s3348_s21, %s3842_s6 }
  0x6f   :  { %p3354_p8 = pnand %p3352_p7, %p3349_p6 }
  0x71   :  { %3357 = shalt.err (!%p3354_p8)
}
  0x72   :  { %s3358_s3 = scalar_lea.vmem %s78_s2, 32  ;;  %p3363_p10 = scmp.lt.s32.totalorder %s78_s2, %s78_s2 }
  0x73   :  { %p3359_p9 = scmp.ne.s32.totalorder %s78_s2, %s3358_s3  ;;  %p3364_p11 = scmp.lt.s32.totalorder %s3358_s3, %s3358_s3 }
  0x75   :  { %p3365_p12 = por %p3364_p11, %p3363_p10 }
  0x77   :  { %p3366_p13 = pnand %p3365_p12, %p3359_p9 }
  0x79   :  { %3369 = shalt.err (!%p3366_p13)
}
  0x7a   :  { %80 = dma.hbm_to_vmem [thread:$0]  %s3842_s6, 32, %s78_s2, [#allocation8]  }
  0x7b   :  { %s3370_s25 = scalar_lea.hbm %s3846_s10, 16 }
  0x7c   :  { %p3371_p0 = scmp.ne.s32.totalorder %s3846_s10, %s3370_s25  ;;  %p3374_p1 = scmp.lt.u32.totalorder %s3370_s25, %s3846_s10 }
  0x7e   :  { %p3376_p2 = pnand %p3374_p1, %p3371_p0 }
  0x80   :  { %3379 = shalt.err (!%p3376_p2)
}
  0x81   :  { %s3380_s28 = scalar_lea.vmem %s102_s16, 16  ;;  %s3384_s14 = scalar_lea.vmem %s102_s16, 32 }
  0x82   :  { %p3381_p3 = scmp.ne.s32.totalorder %s102_s16, %s3380_s28  ;;  %p3385_p4 = scmp.lt.s32.totalorder %s102_s16, %s102_s16 }
  0x83   :  { %p3386_p5 = scmp.lt.s32.totalorder %s3384_s14, %s3380_s28 }
  0x85   :  { %p3387_p6 = por %p3386_p5, %p3385_p4 }
  0x87   :  { %p3388_p7 = pnand %p3387_p6, %p3381_p3 }
  0x89   :  { %3391 = shalt.err (!%p3388_p7)
}
  0x8a   :  { %104 = dma.hbm_to_vmem [thread:$0]  %s3846_s10, 16, %s102_s16, [#allocation11]  }
  0x8b   :  { %s3438_s2 = smov [#allocation15]   ;;  %s3392_s21 = scalar_lea.hbm %s3848_s12, 16 }
  0x8c   :  { %s123_s26 = sshll.u32 %s3438_s2, 4  ;;  %p3393_p8 = scmp.ne.s32.totalorder %s3848_s12, %s3392_s21  ;;  %s124_s26 = int_to_ptr.vmem [resolvable:$true] %s123_s26 }
  0x8d   :  { %p3396_p9 = scmp.lt.u32.totalorder %s3392_s21, %s3848_s12 }
  0x8f   :  { %p3398_p10 = pnand %p3396_p9, %p3393_p8 }
  0x91   :  { %3401 = shalt.err (!%p3398_p10)
}
  0x92   :  { %s3402_s3 = scalar_lea.vmem %s124_s26, 16  ;;  %s3406_s10 = scalar_lea.vmem %s124_s26, 32 }
  0x93   :  { %p3403_p11 = scmp.ne.s32.totalorder %s124_s26, %s3402_s3  ;;  %p3407_p12 = scmp.lt.s32.totalorder %s124_s26, %s124_s26 }
  0x94   :  { %p3408_p13 = scmp.lt.s32.totalorder %s3406_s10, %s3402_s3 }
  0x96   :  { %p3409_p0 = por %p3408_p13, %p3407_p12 }
  0x98   :  { %p3410_p1 = pnand %p3409_p0, %p3403_p11 }
  0x9a   :  { %3413 = shalt.err (!%p3410_p1)
}
  0x9b   :  { %126 = dma.hbm_to_vmem [thread:$0]  %s3848_s12, 16, %s124_s26, [#allocation14]  }
  0x9c   :  { %3414 = dma.done.wait [#allocation3], 80  }
  0x9d   :  { %3415 = vsyncadd [#allocation3], 4294967216 }
  0x9e   :  { %3416 = dma.done.wait [#allocation5], 20560  }
  0x9f   :  { %3417 = vsyncadd [#allocation5], 4294946736 }
  0xa0   :  { %3418 = dma.done.wait [#allocation8], 8224  }
  0xa1   :  { %3419 = vsyncadd [#allocation8], 4294959072 }
  0xa2   :  { %3420 = dma.done.wait [#allocation11], 32  }
  0xa3   :  { %3421 = vsyncadd [#allocation11], 4294967264 }
  0xa4   :  { %3422 = dma.done.wait [#allocation14], 1040  }
  0xa5   :  { %3423 = vsyncadd [#allocation14], 4294966256  ;;  %v2846_v0 = vld [vmem:[#allocation6 + $0x4] ss:$16 sps:$4 sm:$0xff]   ;;  %v2848_v1 = vld [vmem:[#allocation6 + $0xc] ss:$16 sps:$4 sm:$0xff]   ;;  %v159_v36 = vlaneseq }
  0xa6   :  { %1275 = vmatprep.subr.bf16.mxu0 %v2846_v0  ;;  %v2850_v2 = vld [vmem:[#allocation6] ss:$16 sps:$4 sm:$0xff]   ;;  %v2851_v3 = vld [vmem:[#allocation6 + $0x8] ss:$16 sps:$4 sm:$0xff]   ;;  %1398 = vmatprep.subr.bf16.mxu1 %v2848_v1  ;;  %v2852_v4 = vld [vmem:[#allocation6 + $0x24] ss:$16 sps:$4 sm:$0xff]  }
  0xa7   :  { %1276 = vmatpush1.bf16.msra.mxu0 %v2850_v2  ;;  %1399 = vmatpush1.bf16.msra.mxu1 %v2851_v3  ;;  %v2854_v5 = vld [vmem:[#allocation6 + $0x2c] ss:$16 sps:$4 sm:$0xff]   ;;  %v2856_v6 = vld [vmem:[#allocation6 + $0x20] ss:$16 sps:$4 sm:$0xff]   ;;  %v2857_v7 = vld [vmem:[#allocation6 + $0x28] ss:$16 sps:$4 sm:$0xff]  }
  0xa8   :  { %1277 = vmatprep.subr.bf16.mxu0 %v2852_v4  ;;  %1400 = vmatprep.subr.bf16.mxu1 %v2854_v5  ;;  %v2858_v8 = vld [vmem:[#allocation6 + $0x44] ss:$16 sps:$4 sm:$0xff]   ;;  %v2860_v9 = vld [vmem:[#allocation6 + $0x4c] ss:$16 sps:$4 sm:$0xff]   ;;  %v2862_v10 = vld [vmem:[#allocation6 + $0x40] ss:$16 sps:$4 sm:$0xff]  }
  0xa9   :  { %v2863_v11 = vld [vmem:[#allocation6 + $0x48] ss:$16 sps:$4 sm:$0xff]   ;;  %v2864_v12 = vld [vmem:[#allocation6 + $0x64] ss:$16 sps:$4 sm:$0xff]   ;;  %v2866_v13 = vld [vmem:[#allocation6 + $0x6c] ss:$16 sps:$4 sm:$0xff]  }
  0xaa   :  { %v2868_v14 = vld [vmem:[#allocation6 + $0x60] ss:$16 sps:$4 sm:$0xff]   ;;  %v2869_v15 = vld [vmem:[#allocation6 + $0x68] ss:$16 sps:$4 sm:$0xff]   ;;  %v2870_v16 = vld [vmem:[#allocation6 + $0x84] ss:$16 sps:$4 sm:$0xff]  }
  0xab   :  { %1278 = vmatpush1.bf16.msra.mxu0 %v2856_v6  ;;  %1401 = vmatpush1.bf16.msra.mxu1 %v2857_v7  ;;  %v2872_v17 = vld [vmem:[#allocation6 + $0x8c] ss:$16 sps:$4 sm:$0xff]   ;;  %v2874_v18 = vld [vmem:[#allocation6 + $0x80] ss:$16 sps:$4 sm:$0xff]   ;;  %v2875_v19 = vld [vmem:[#allocation6 + $0x88] ss:$16 sps:$4 sm:$0xff]  }
  0xac   :  { %1279 = vmatprep.subr.bf16.mxu0 %v2858_v8  ;;  %1402 = vmatprep.subr.bf16.mxu1 %v2860_v9  ;;  %v2876_v20 = vld [vmem:[#allocation6 + $0xa4] ss:$16 sps:$4 sm:$0xff]   ;;  %v2878_v21 = vld [vmem:[#allocation6 + $0xac] ss:$16 sps:$4 sm:$0xff]   ;;  %v2880_v22 = vld [vmem:[#allocation6 + $0xa0] ss:$16 sps:$4 sm:$0xff]  }
  0xad   :  { %v2881_v23 = vld [vmem:[#allocation6 + $0xa8] ss:$16 sps:$4 sm:$0xff]   ;;  %v2882_v24 = vld [vmem:[#allocation6 + $0xc4] ss:$16 sps:$4 sm:$0xff]   ;;  %v2884_v25 = vld [vmem:[#allocation6 + $0xcc] ss:$16 sps:$4 sm:$0xff]  }
  0xae   :  { %v2886_v26 = vld [vmem:[#allocation6 + $0xc0] ss:$16 sps:$4 sm:$0xff]   ;;  %v2887_v27 = vld [vmem:[#allocation6 + $0xc8] ss:$16 sps:$4 sm:$0xff]   ;;  %v2888_v28 = vld [vmem:[#allocation6 + $0xe4] ss:$16 sps:$4 sm:$0xff]  }
  0xaf   :  { %1280 = vmatpush1.bf16.msra.mxu0 %v2862_v10  ;;  %1403 = vmatpush1.bf16.msra.mxu1 %v2863_v11  ;;  %v2890_v29 = vld [vmem:[#allocation6 + $0xec] ss:$16 sps:$4 sm:$0xff]   ;;  %v2892_v30 = vld [vmem:[#allocation6 + $0xe0] ss:$16 sps:$4 sm:$0xff]   ;;  %v2893_v31 = vld [vmem:[#allocation6 + $0xe8] ss:$16 sps:$4 sm:$0xff]  }
  0xb0   :  { %1281 = vmatprep.subr.bf16.mxu0 %v2864_v12  ;;  %1404 = vmatprep.subr.bf16.mxu1 %v2866_v13  ;;  %v2894_v32 = vld [vmem:[#allocation6 + $0x104] ss:$16 sps:$4 sm:$0xff]   ;;  %v2896_v33 = vld [vmem:[#allocation6 + $0x10c] ss:$16 sps:$4 sm:$0xff]   ;;  %v2898_v34 = vld [vmem:[#allocation6 + $0x100] ss:$16 sps:$4 sm:$0xff]  }
  0xb1   :  { %v2899_v35 = vld [vmem:[#allocation6 + $0x108] ss:$16 sps:$4 sm:$0xff]   ;;  %v2900_v37 = vld [vmem:[#allocation6 + $0x124] ss:$16 sps:$4 sm:$0xff]   ;;  %v2902_v38 = vld [vmem:[#allocation6 + $0x12c] ss:$16 sps:$4 sm:$0xff]  }
  0xb2   :  { %v2904_v39 = vld [vmem:[#allocation6 + $0x120] ss:$16 sps:$4 sm:$0xff]   ;;  %v3642_v40 = vshrl.u32 %v159_v36, 7  ;;  %v3439_v41 = vmov 1983009808   ;;  %vm3442_vm0 = vmmov 0  }
  0xb3   :  { %1282 = vmatpush1.bf16.msra.mxu0 %v2868_v14  ;;  %1405 = vmatpush1.bf16.msra.mxu1 %v2869_v15  ;;  %v182_v42 = vunpack.c.l.s4 %v3439_v41  ;;  %v2905_v43 = vld [vmem:[#allocation6 + $0x128] ss:$16 sps:$4 sm:$0xff]   ;;  %v2906_v44 = vld [vmem:[#allocation6 + $0x144] ss:$16 sps:$4 sm:$0xff]   ;;  %v2908_v45 = vld [vmem:[#allocation6 + $0x14c] ss:$16 sps:$4 sm:$0xff]  }
  0xb4   :  { %1283 = vmatprep.subr.bf16.mxu0 %v2870_v16  ;;  %1406 = vmatprep.subr.bf16.mxu1 %v2872_v17  ;;  %v2910_v46 = vld [vmem:[#allocation6 + $0x140] ss:$16 sps:$4 sm:$0xff]   ;;  %v2911_v47 = vld [vmem:[#allocation6 + $0x148] ss:$16 sps:$4 sm:$0xff]   ;;  %v3645_v48 = vsub.s32 0, %v3642_v40  ;;  %v3648_v51 = vsub.s32 1, %v3642_v40 }
  0xb5   :  { %v183_v49 = vunpack.c.0.s8 %v182_v42  ;;  %v2912_v50 = vld [vmem:[#allocation6 + $0x164] ss:$16 sps:$4 sm:$0xff]   ;;  %v3651_v52 = vsub.s32 2, %v3642_v40  ;;  %v2914_v53 = vld [vmem:[#allocation6 + $0x16c] ss:$16 sps:$4 sm:$0xff]   ;;  %v3654_v54 = vsub.s32 3, %v3642_v40 }
  0xb6   :  { %v2916_v55 = vld [vmem:[#allocation6 + $0x160] ss:$16 sps:$4 sm:$0xff]   ;;  %v3656_v56 = vld [vmem:[#allocation2] sm:$0x1f]  ;;  %v3661_v58 = vld [vmem:[#allocation4] sm:$0x1f] }
  0xb7   :  { %1284 = vmatpush1.bf16.msra.mxu0 %v2874_v18  ;;  %1407 = vmatpush1.bf16.msra.mxu1 %v2875_v19  ;;  %v3659_v57 = vsub.s32 %v183_v49, %v3642_v40  ;;  %v2917_v59 = vld [vmem:[#allocation6 + $0x168] ss:$16 sps:$4 sm:$0xff]   ;;  %v2918_v60 = vld [vmem:[#allocation6 + $0x184] ss:$16 sps:$4 sm:$0xff]   ;;  %v162_v61 = vrot.slane %v3656_v56, %v3645_v48  ;;  %v166_v62 = vrot.slane %v3656_v56, %v3648_v51  ;;  %v2920_v0 = vld [vmem:[#allocation6 + $0x18c] ss:$16 sps:$4 sm:$0xff]  }
  0xb8   :  { %1285 = vmatprep.subr.bf16.mxu0 %v2876_v20  ;;  %1408 = vmatprep.subr.bf16.mxu1 %v2878_v21  ;;  %v170_v63 = vrot.slane %v3656_v56, %v3651_v52  ;;  %v174_v1 = vrot.slane %v3656_v56, %v3654_v54  ;;  %v212_v2 = vrot.slane %v3661_v58, %v3645_v48  ;;  %v2922_v7 = vld [vmem:[#allocation6 + $0x180] ss:$16 sps:$4 sm:$0xff]   ;;  %v2923_v10 = vld [vmem:[#allocation6 + $0x188] ss:$16 sps:$4 sm:$0xff]   ;;  %v2924_v11 = vld [vmem:[#allocation6 + $0x1a4] ss:$16 sps:$4 sm:$0xff]  }
  0xb9   :  { %v216_v3 = vrot.slane %v3661_v58, %v3648_v51  ;;  %v179_v4 = vcombine.low %v162_v61, %v166_v62  ;;  %v220_v5 = vrot.slane %v3661_v58, %v3651_v52  ;;  %v224_v6 = vrot.slane %v3661_v58, %v3654_v54  ;;  %v2926_v14 = vld [vmem:[#allocation6 + $0x1ac] ss:$16 sps:$4 sm:$0xff]   ;;  %v155_v17 = vld [vmem:[%s3836_s0] sm:$0xff]  ;;  %v2928_v19 = vld [vmem:[#allocation6 + $0x1a0] ss:$16 sps:$4 sm:$0xff]  }
  0xba   :  { %v180_v8 = vcombine.low %v170_v63, %v174_v1  ;;  %v2929_v21 = vld [vmem:[#allocation6 + $0x1a8] ss:$16 sps:$4 sm:$0xff]   ;;  %v2942_v42 = vld [vmem:[#allocation6 + $0x200] ss:$16 sps:$4 sm:$0xff]   ;;  %v2962_v61 = vld [vmem:[#allocation6 + $0x264] ss:$16 sps:$4 sm:$0xff]  }
  0xbb   :  { %1286 = vmatpush1.bf16.msra.mxu0 %v2880_v22  ;;  %1409 = vmatpush1.bf16.msra.mxu1 %v2881_v23  ;;  %v229_v9 = vcombine.low %v212_v2, %v216_v3  ;;  %v187_v12 = vrot.slane %v179_v4, %v3659_v57  ;;  %v230_v13 = vcombine.low %v220_v5, %v224_v6  ;;  %v2930_v22 = vld [vmem:[#allocation6 + $0x1c4] ss:$16 sps:$4 sm:$0xff]   ;;  %v2941_v36 = vld [vmem:[#allocation6 + $0x1e8] ss:$16 sps:$4 sm:$0xff]   ;;  %v2948_v49 = vld [vmem:[#allocation6 + $0x220] ss:$16 sps:$4 sm:$0xff]  }
  0xbc   :  { %1287 = vmatprep.subr.bf16.mxu0 %v2882_v24  ;;  %1410 = vmatprep.subr.bf16.mxu1 %v2884_v25  ;;  %v194_v15 = vrot.slane %v180_v8, %v3659_v57  ;;  %v2932_v24 = vld [vmem:[#allocation6 + $0x1cc] ss:$16 sps:$4 sm:$0xff]   ;;  %v2960_v63 = vld [vmem:[#allocation6 + $0x260] ss:$16 sps:$4 sm:$0xff]   ;;  %v2968_v1 = vld [vmem:[#allocation6 + $0x284] ss:$16 sps:$4 sm:$0xff]  }
  0xbd   :  { %v237_v16 = vrot.slane %v229_v9, %v3659_v57  ;;  %v244_v18 = vrot.slane %v230_v13, %v3659_v57  ;;  %v2965_v62 = vld [vmem:[#allocation6 + $0x26c] ss:$16 sps:$4 sm:$0xff]   ;;  %v2966_v3 = vld [vmem:[#allocation6 + $0x280] ss:$16 sps:$4 sm:$0xff]   ;;  %v2969_v4 = vld [vmem:[#allocation6 + $0x288] ss:$16 sps:$4 sm:$0xff]  }
  0xbe   :  { %v195_v20 = vcombine.low %v187_v12, %v194_v15  ;;  %v2971_v2 = vld [vmem:[#allocation6 + $0x28c] ss:$16 sps:$4 sm:$0xff]   ;;  %v2974_v5 = vld [vmem:[#allocation6 + $0x2a4] ss:$16 sps:$4 sm:$0xff]   ;;  %v2975_v8 = vld [vmem:[#allocation6 + $0x2a8] ss:$16 sps:$4 sm:$0xff]  }
  0xbf   :  { %1288 = vmatpush1.bf16.msra.mxu0 %v2886_v26  ;;  %1411 = vmatpush1.bf16.msra.mxu1 %v2887_v27  ;;  %v245_v23 = vcombine.low %v237_v16, %v244_v18  ;;  %v2934_v26 = vld [vmem:[#allocation6 + $0x1c0] ss:$16 sps:$4 sm:$0xff]   ;;  %v2977_v6 = vld [vmem:[#allocation6 + $0x2ac] ss:$16 sps:$4 sm:$0xff]   ;;  %v2980_v9 = vld [vmem:[#allocation6 + $0x2c4] ss:$16 sps:$4 sm:$0xff]  }
  0xc0   :  { %1289 = vmatprep.subr.bf16.mxu0 %v2888_v28  ;;  %1412 = vmatprep.subr.bf16.mxu1 %v2890_v29  ;;  %v205_v25 = vmul.f32 %v195_v20, %v155_v17  ;;  %v2935_v28 = vld [vmem:[#allocation6 + $0x1c8] ss:$16 sps:$4 sm:$0xff]   ;;  %v2936_v29 = vld [vmem:[#allocation6 + $0x1e4] ss:$16 sps:$4 sm:$0xff]   ;;  %v2984_v15 = vld [vmem:[#allocation6 + $0x2e0] ss:$16 sps:$4 sm:$0xff]  }
  0xc1   :  { %v2981_v12 = vld [vmem:[#allocation6 + $0x2c8] ss:$16 sps:$4 sm:$0xff]   ;;  %v2986_v13 = vld [vmem:[#allocation6 + $0x2e4] ss:$16 sps:$4 sm:$0xff]   ;;  %v2995_v18 = vld [vmem:[#allocation6 + $0x30c] ss:$16 sps:$4 sm:$0xff]  }
  0xc2   :  { %v255_v27 = vadd.f32 %v245_v23, %v205_v25  ;;  %v2987_v16 = vld [vmem:[#allocation6 + $0x2e8] ss:$16 sps:$4 sm:$0xff]   ;;  %v2992_v17 = vld [vmem:[#allocation6 + $0x304] ss:$16 sps:$4 sm:$0xff]   ;;  %v3001_v23 = vld [vmem:[#allocation6 + $0x32c] ss:$16 sps:$4 sm:$0xff]  }
  0xc3   :  { %1290 = vmatpush1.bf16.msra.mxu0 %v2892_v30  ;;  %1413 = vmatpush1.bf16.msra.mxu1 %v2893_v31  ;;  %v2938_v30 = vld [vmem:[#allocation6 + $0x1ec] ss:$16 sps:$4 sm:$0xff]   ;;  %v2993_v20 = vld [vmem:[#allocation6 + $0x308] ss:$16 sps:$4 sm:$0xff]  }
  0xc4   :  { %1291 = vmatprep.subr.bf16.mxu0 %v2894_v32  ;;  %1414 = vmatprep.subr.bf16.mxu1 %v2896_v33  ;;  %v266_v31 = vrot.slane %v255_v27, %v3659_v57  ;;  %2412 = vst [vmem:[%s3849_s13] sm:$0xff] %v255_v27  ;;  %v259_v32 = vcombine.high %v255_v27, %v255_v27  ;;  %v2940_v33 = vld [vmem:[#allocation6 + $0x1e0] ss:$16 sps:$4 sm:$0xff]   ;;  %v2999_v25 = vld [vmem:[#allocation6 + $0x328] ss:$16 sps:$4 sm:$0xff]  }
  0xc7   :  { %1292 = vmatpush1.bf16.msra.mxu0 %v2898_v34  ;;  %1415 = vmatpush1.bf16.msra.mxu1 %v2899_v35  ;;  %v274_v34 = vcombine.high %v266_v31, %v266_v31  ;;  %v3691_v35 = vrot.slane %v259_v32, %v3659_v57 }
  0xc8   :  { %1293 = vmatprep.subr.bf16.mxu0 %v2900_v37  ;;  %1416 = vmatprep.subr.bf16.mxu1 %v2902_v38  ;;  %v2944_v37 = vld [vmem:[#allocation6 + $0x204] ss:$16 sps:$4 sm:$0xff]  }
  0xc9   :  { %v289_v38 = vpack.c.bf16 %v274_v34, %v274_v34  ;;  %v275_v41 = vcombine.high %v3691_v35, %v3691_v35 }
  0xcb   :  { %1294 = vmatpush1.bf16.msra.mxu0 %v2904_v39  ;;  %1417 = vmatpush1.bf16.msra.mxu1 %v2905_v43  ;;  %v2947_v39 = vld [vmem:[#allocation6 + $0x20c] ss:$16 sps:$4 sm:$0xff]   ;;  %v288_v43 = vpack.c.bf16 %v266_v31, %v266_v31  ;;  %v3005_v31 = vld [vmem:[#allocation6 + $0x348] ss:$16 sps:$4 sm:$0xff]  }
  0xcc   :  { %1295 = vmatprep.subr.bf16.mxu0 %v2906_v44  ;;  %1418 = vmatprep.subr.bf16.mxu1 %v2908_v45  ;;  %v2945_v44 = vld [vmem:[#allocation6 + $0x208] ss:$16 sps:$4 sm:$0xff]   ;;  %v2950_v45 = vld [vmem:[#allocation6 + $0x224] ss:$16 sps:$4 sm:$0xff]  }
  0xcd   :  { %1307 = vmatprep.mubr.bf16.mxu0 %v289_v38  ;;  %1430 = vmatprep.mubr.bf16.mxu1 %v289_v38 }
  0xcf   :  { %1296 = vmatpush1.bf16.msra.mxu0 %v2910_v46  ;;  %1419 = vmatpush1.bf16.msra.mxu1 %v2911_v47  ;;  %v2953_v46 = vld [vmem:[#allocation6 + $0x22c] ss:$16 sps:$4 sm:$0xff]   ;;  %v291_v47 = vpack.c.bf16 %v275_v41, %v275_v41 }
  0xd0   :  { %1297 = vmatprep.subr.bf16.mxu0 %v2912_v50  ;;  %1420 = vmatprep.subr.bf16.mxu1 %v2914_v53  ;;  %v2951_v50 = vld [vmem:[#allocation6 + $0x228] ss:$16 sps:$4 sm:$0xff]   ;;  %v2956_v53 = vld [vmem:[#allocation6 + $0x244] ss:$16 sps:$4 sm:$0xff]  }
  0xd3   :  { %1298 = vmatpush1.bf16.msra.mxu0 %v2916_v55  ;;  %1421 = vmatpush1.bf16.msra.mxu1 %v2917_v59  ;;  %v2959_v55 = vld [vmem:[#allocation6 + $0x24c] ss:$16 sps:$4 sm:$0xff]   ;;  %v2954_v59 = vld [vmem:[#allocation6 + $0x240] ss:$16 sps:$4 sm:$0xff]  }
  0xd4   :  { %1299 = vmatprep.subr.bf16.mxu0 %v2918_v60  ;;  %1422 = vmatprep.subr.bf16.mxu1 %v2920_v0  ;;  %v2957_v60 = vld [vmem:[#allocation6 + $0x248] ss:$16 sps:$4 sm:$0xff]  }
  0xd5   :  { %v2963_v0 = vld [vmem:[#allocation6 + $0x268] ss:$16 sps:$4 sm:$0xff]  }
  0xd7   :  { %1300 = vmatpush1.bf16.msra.mxu0 %v2922_v7  ;;  %1423 = vmatpush1.bf16.msra.mxu1 %v2923_v10  ;;  %v2972_v7 = vld [vmem:[#allocation6 + $0x2a0] ss:$16 sps:$4 sm:$0xff]   ;;  %v2983_v10 = vld [vmem:[#allocation6 + $0x2cc] ss:$16 sps:$4 sm:$0xff]  }
  0xd8   :  { %1301 = vmatprep.subr.bf16.mxu0 %v2924_v11  ;;  %1424 = vmatprep.subr.bf16.mxu1 %v2926_v14  ;;  %v2978_v11 = vld [vmem:[#allocation6 + $0x2c0] ss:$16 sps:$4 sm:$0xff]   ;;  %v2989_v14 = vld [vmem:[#allocation6 + $0x2ec] ss:$16 sps:$4 sm:$0xff]  }
  0xdb   :  { %1302 = vmatpush1.bf16.msra.mxu0 %v2928_v19  ;;  %1425 = vmatpush1.bf16.msra.mxu1 %v2929_v21  ;;  %v2990_v19 = vld [vmem:[#allocation6 + $0x300] ss:$16 sps:$4 sm:$0xff]   ;;  %v2998_v21 = vld [vmem:[#allocation6 + $0x324] ss:$16 sps:$4 sm:$0xff]  }
  0xdc   :  { %1303 = vmatprep.subr.bf16.mxu0 %v2930_v22  ;;  %1426 = vmatprep.subr.bf16.mxu1 %v2932_v24  ;;  %v177_v22 = vsub.s32 4, %v3642_v40  ;;  %v2996_v24 = vld [vmem:[#allocation6 + $0x320] ss:$16 sps:$4 sm:$0xff]   ;;  %v3010_v40 = vld [vmem:[#allocation6 + $0x364] ss:$16 sps:$4 sm:$0xff]  }
  0xde   :  { %v178_v27 = vrot.slane %v3656_v56, %v177_v22  ;;  %v156_v56 = vld [vmem:[%s3836_s0 + $0x8] sm:$0x3] }
  0xdf   :  { %1304 = vmatpush1.bf16.msra.mxu0 %v2934_v26  ;;  %1427 = vmatpush1.bf16.msra.mxu1 %v2935_v28  ;;  %v3004_v26 = vld [vmem:[#allocation6 + $0x344] ss:$16 sps:$4 sm:$0xff]   ;;  %v3007_v28 = vld [vmem:[#allocation6 + $0x34c] ss:$16 sps:$4 sm:$0xff]  }
  0xe0   :  { %1305 = vmatprep.subr.bf16.mxu0 %v2936_v29  ;;  %1428 = vmatprep.subr.bf16.mxu1 %v2938_v30  ;;  %v228_v29 = vrot.slane %v3661_v58, %v177_v22  ;;  %v3002_v30 = vld [vmem:[#allocation6 + $0x340] ss:$16 sps:$4 sm:$0xff]   ;;  %v202_v32 = vrot.slane %v178_v27, %v3659_v57  ;;  %v3016_v58 = vld [vmem:[#allocation6 + $0x384] ss:$16 sps:$4 sm:$0xff]   ;;  %v3077_v27 = vld [vmem:[#allocation6 + $0x4c8] ss:$16 sps:$4 sm:$0xff]  }
  0xe1   :  { %v3068_v22 = vld [vmem:[#allocation6 + $0x4a0] ss:$16 sps:$4 sm:$0xff]  }
  0xe2   :  { %v252_v34 = vrot.slane %v228_v29, %v3659_v57  ;;  %v206_v38 = vmul.f32 %v202_v32, %v156_v56  ;;  %v3085_v29 = vld [vmem:[#allocation6 + $0x4ec] ss:$16 sps:$4 sm:$0xff]  }
  0xe3   :  { %1306 = vmatpush1.bf16.msra.mxu0 %v2940_v33  ;;  %1429 = vmatpush1.bf16.msra.mxu1 %v2941_v36  ;;  %v3013_v33 = vld [vmem:[#allocation6 + $0x36c] ss:$16 sps:$4 sm:$0xff]   ;;  %v3008_v36 = vld [vmem:[#allocation6 + $0x360] ss:$16 sps:$4 sm:$0xff]  }
  0xe4   :  { %1316 = vmatprep.subr.bf16.mxu0 %v2944_v37  ;;  %1439 = vmatprep.subr.bf16.mxu1 %v2947_v39  ;;  %v3011_v37 = vld [vmem:[#allocation6 + $0x368] ss:$16 sps:$4 sm:$0xff]   ;;  %v3019_v39 = vld [vmem:[#allocation6 + $0x38c] ss:$16 sps:$4 sm:$0xff]   ;;  %v3703_v41 = vadd.f32 %v252_v34, %v206_v38 }
  0xe5   :  { %v3088_v32 = vld [vmem:[#allocation7 + $0x4] ss:$8 sps:$4 sm:$0xff]   ;;  %v3086_v34 = vld [vmem:[#allocation7] ss:$8 sps:$4 sm:$0xff]   ;;  %v3097_v38 = vld [vmem:[#allocation7 + $0x34] ss:$8 sps:$4 sm:$0xff]  }
  0xe6   :  { %1308 = vmatmul.mubr.bf16.vlgmr.msra.gmra.mrb[0].mxu0 %v288_v43  ;;  %1431 = vmatmul.mubr.bf16.vlgmr.msra.gmra.mrb[0].mxu1 %v288_v43  ;;  %v3017_v43 = vld [vmem:[#allocation6 + $0x388] ss:$16 sps:$4 sm:$0xff]   ;;  %2413 = vst [vmem:[%s3849_s13 + $0x8] sm:$0x3] %v3703_v41  ;;  %v3094_v56 = vld [vmem:[#allocation7 + $0x24] ss:$8 sps:$4 sm:$0xff]  }
  0xe7   :  { %1317 = vmatpush1.bf16.msra.mxu0 %v2942_v42  ;;  %1440 = vmatpush1.bf16.msra.mxu1 %v2945_v44  ;;  %v3014_v42 = vld [vmem:[#allocation6 + $0x380] ss:$16 sps:$4 sm:$0xff]   ;;  %v3022_v44 = vld [vmem:[#allocation6 + $0x3a4] ss:$16 sps:$4 sm:$0xff]  }
  0xe8   :  { %1318 = vmatprep.subr.bf16.mxu0 %v2950_v45  ;;  %1441 = vmatprep.subr.bf16.mxu1 %v2953_v46  ;;  %v3025_v45 = vld [vmem:[#allocation6 + $0x3ac] ss:$16 sps:$4 sm:$0xff]   ;;  %v3020_v46 = vld [vmem:[#allocation6 + $0x3a0] ss:$16 sps:$4 sm:$0xff]  }
  0xe9   :  { %1348 = vmatprep.mubr.bf16.mxu0 %v291_v47  ;;  %1471 = vmatprep.mubr.bf16.mxu1 %v291_v47  ;;  %v3023_v47 = vld [vmem:[#allocation6 + $0x3a8] ss:$16 sps:$4 sm:$0xff]  }
  0xeb   :  { %1319 = vmatpush1.bf16.msra.mxu0 %v2948_v49  ;;  %1442 = vmatpush1.bf16.msra.mxu1 %v2951_v50  ;;  %v3028_v49 = vld [vmem:[#allocation6 + $0x3c4] ss:$16 sps:$4 sm:$0xff]   ;;  %v3031_v50 = vld [vmem:[#allocation6 + $0x3cc] ss:$16 sps:$4 sm:$0xff]  }
  0xec   :  { %1320 = vmatprep.subr.bf16.mxu0 %v2956_v53  ;;  %1443 = vmatprep.subr.bf16.mxu1 %v2959_v55  ;;  %v3026_v53 = vld [vmem:[#allocation6 + $0x3c0] ss:$16 sps:$4 sm:$0xff]   ;;  %v3029_v55 = vld [vmem:[#allocation6 + $0x3c8] ss:$16 sps:$4 sm:$0xff]  }
  0xef   :  { %1321 = vmatpush1.bf16.msra.mxu0 %v2954_v59  ;;  %1444 = vmatpush1.bf16.msra.mxu1 %v2957_v60  ;;  %v3034_v59 = vld [vmem:[#allocation6 + $0x3e4] ss:$16 sps:$4 sm:$0xff]   ;;  %v3037_v60 = vld [vmem:[#allocation6 + $0x3ec] ss:$16 sps:$4 sm:$0xff]  }
  0xf0   :  { %1322 = vmatprep.subr.bf16.mxu0 %v2962_v61  ;;  %1445 = vmatprep.subr.bf16.mxu1 %v2965_v62  ;;  %v3032_v61 = vld [vmem:[#allocation6 + $0x3e0] ss:$16 sps:$4 sm:$0xff]   ;;  %v3035_v62 = vld [vmem:[#allocation6 + $0x3e8] ss:$16 sps:$4 sm:$0xff]  }
  0xf3   :  { %1323 = vmatpush1.bf16.msra.mxu0 %v2960_v63  ;;  %1446 = vmatpush1.bf16.msra.mxu1 %v2963_v0  ;;  %v3040_v63 = vld [vmem:[#allocation6 + $0x404] ss:$16 sps:$4 sm:$0xff]   ;;  %v3043_v0 = vld [vmem:[#allocation6 + $0x40c] ss:$16 sps:$4 sm:$0xff]  }
  0xf4   :  { %1324 = vmatprep.subr.bf16.mxu0 %v2968_v1  ;;  %1447 = vmatprep.subr.bf16.mxu1 %v2971_v2  ;;  %v3038_v1 = vld [vmem:[#allocation6 + $0x400] ss:$16 sps:$4 sm:$0xff]   ;;  %v3041_v2 = vld [vmem:[#allocation6 + $0x408] ss:$16 sps:$4 sm:$0xff]  }
  0xf7   :  { %1325 = vmatpush1.bf16.msra.mxu0 %v2966_v3  ;;  %1448 = vmatpush1.bf16.msra.mxu1 %v2969_v4  ;;  %v290_v3 = vpack.c.bf16 %v3691_v35, %v3691_v35  ;;  %v3046_v4 = vld [vmem:[#allocation6 + $0x424] ss:$16 sps:$4 sm:$0xff]  }
  0xf8   :  { %1326 = vmatprep.subr.bf16.mxu0 %v2974_v5  ;;  %1449 = vmatprep.subr.bf16.mxu1 %v2977_v6  ;;  %v3049_v5 = vld [vmem:[#allocation6 + $0x42c] ss:$16 sps:$4 sm:$0xff]   ;;  %v3044_v6 = vld [vmem:[#allocation6 + $0x420] ss:$16 sps:$4 sm:$0xff]   ;;  %v3058_v35 = vld [vmem:[#allocation6 + $0x464] ss:$16 sps:$4 sm:$0xff]  }
  0xfb   :  { %1327 = vmatpush1.bf16.msra.mxu0 %v2972_v7  ;;  %1450 = vmatpush1.bf16.msra.mxu1 %v2975_v8  ;;  %v3047_v7 = vld [vmem:[#allocation6 + $0x428] ss:$16 sps:$4 sm:$0xff]   ;;  %v3052_v8 = vld [vmem:[#allocation6 + $0x444] ss:$16 sps:$4 sm:$0xff]  }
  0xfc   :  { %1328 = vmatprep.subr.bf16.mxu0 %v2980_v9  ;;  %1451 = vmatprep.subr.bf16.mxu1 %v2983_v10  ;;  %v3055_v9 = vld [vmem:[#allocation6 + $0x44c] ss:$16 sps:$4 sm:$0xff]   ;;  %v3050_v10 = vld [vmem:[#allocation6 + $0x440] ss:$16 sps:$4 sm:$0xff]  }
  0xff   :  { %1329 = vmatpush1.bf16.msra.mxu0 %v2978_v11  ;;  %1452 = vmatpush1.bf16.msra.mxu1 %v2981_v12  ;;  %v3053_v11 = vld [vmem:[#allocation6 + $0x448] ss:$16 sps:$4 sm:$0xff]   ;;  %v3440_v12 = vmov 0  }
 0x100   :  { %1330 = vmatprep.subr.bf16.mxu0 %v2986_v13  ;;  %1453 = vmatprep.subr.bf16.mxu1 %v2989_v14  ;;  %v3061_v13 = vld [vmem:[#allocation6 + $0x46c] ss:$16 sps:$4 sm:$0xff]   ;;  %v3056_v14 = vld [vmem:[#allocation6 + $0x460] ss:$16 sps:$4 sm:$0xff]  }
 0x103   :  { %1331 = vmatpush1.bf16.msra.mxu0 %v2984_v15  ;;  %1454 = vmatpush1.bf16.msra.mxu1 %v2987_v16  ;;  %v3059_v15 = vld [vmem:[#allocation6 + $0x468] ss:$16 sps:$4 sm:$0xff]   ;;  %v3064_v16 = vld [vmem:[#allocation6 + $0x484] ss:$16 sps:$4 sm:$0xff]  }
 0x104   :  { %1332 = vmatprep.subr.bf16.mxu0 %v2992_v17  ;;  %1455 = vmatprep.subr.bf16.mxu1 %v2995_v18  ;;  %v3067_v17 = vld [vmem:[#allocation6 + $0x48c] ss:$16 sps:$4 sm:$0xff]   ;;  %v3062_v18 = vld [vmem:[#allocation6 + $0x480] ss:$16 sps:$4 sm:$0xff]  }
 0x107   :  { %1333 = vmatpush1.bf16.msra.mxu0 %v2990_v19  ;;  %1456 = vmatpush1.bf16.msra.mxu1 %v2993_v20  ;;  %v3065_v19 = vld [vmem:[#allocation6 + $0x488] ss:$16 sps:$4 sm:$0xff]   ;;  %v3070_v20 = vld [vmem:[#allocation6 + $0x4a4] ss:$16 sps:$4 sm:$0xff]  }
 0x108   :  { %1334 = vmatprep.subr.bf16.mxu0 %v2998_v21  ;;  %1457 = vmatprep.subr.bf16.mxu1 %v3001_v23  ;;  %v3073_v21 = vld [vmem:[#allocation6 + $0x4ac] ss:$16 sps:$4 sm:$0xff]   ;;  %v3071_v23 = vld [vmem:[#allocation6 + $0x4a8] ss:$16 sps:$4 sm:$0xff]  }
 0x10b   :  { %1335 = vmatpush1.bf16.msra.mxu0 %v2996_v24  ;;  %1458 = vmatpush1.bf16.msra.mxu1 %v2999_v25  ;;  %v3076_v24 = vld [vmem:[#allocation6 + $0x4c4] ss:$16 sps:$4 sm:$0xff]   ;;  %v3079_v25 = vld [vmem:[#allocation6 + $0x4cc] ss:$16 sps:$4 sm:$0xff]  }
 0x10c   :  { %1336 = vmatprep.subr.bf16.mxu0 %v3004_v26  ;;  %1459 = vmatprep.subr.bf16.mxu1 %v3007_v28  ;;  %v3074_v26 = vld [vmem:[#allocation6 + $0x4c0] ss:$16 sps:$4 sm:$0xff]   ;;  %v3082_v28 = vld [vmem:[#allocation6 + $0x4e4] ss:$16 sps:$4 sm:$0xff]  }
 0x10f   :  { %1337 = vmatpush1.bf16.msra.mxu0 %v3002_v30  ;;  %1460 = vmatpush1.bf16.msra.mxu1 %v3005_v31  ;;  %v3080_v30 = vld [vmem:[#allocation6 + $0x4e0] ss:$16 sps:$4 sm:$0xff]   ;;  %v3083_v31 = vld [vmem:[#allocation6 + $0x4e8] ss:$16 sps:$4 sm:$0xff]  }
 0x110   :  { %1338 = vmatprep.subr.bf16.mxu0 %v3010_v40  ;;  %1461 = vmatprep.subr.bf16.mxu1 %v3013_v33  ;;  %v282_v40 = vrot.slane %v3703_v41, %v3659_v57  ;;  %v3100_v41 = vld [vmem:[#allocation7 + $0x44] ss:$8 sps:$4 sm:$0xff]  }
 0x112   :  { %v292_v33 = vpack.c.bf16 %v282_v40, %v282_v40 }
 0x113   :  { %1339 = vmatpush1.bf16.msra.mxu0 %v3008_v36  ;;  %1462 = vmatpush1.bf16.msra.mxu1 %v3011_v37  ;;  %v3091_v36 = vld [vmem:[#allocation7 + $0x14] ss:$8 sps:$4 sm:$0xff]   ;;  %v3089_v37 = vld [vmem:[#allocation7 + $0x10] ss:$8 sps:$4 sm:$0xff]  }
 0x114   :  { %1340 = vmatprep.subr.bf16.mxu0 %v3016_v58  ;;  %1463 = vmatprep.subr.bf16.mxu1 %v3019_v39  ;;  %v3092_v58 = vld [vmem:[#allocation7 + $0x20] ss:$8 sps:$4 sm:$0xff]   ;;  %v3095_v39 = vld [vmem:[#allocation7 + $0x30] ss:$8 sps:$4 sm:$0xff]  }
 0x117   :  { %1341 = vmatpush1.bf16.msra.mxu0 %v3014_v42  ;;  %1464 = vmatpush1.bf16.msra.mxu1 %v3017_v43  ;;  %v3098_v42 = vld [vmem:[#allocation7 + $0x40] ss:$8 sps:$4 sm:$0xff]   ;;  %v3103_v43 = vld [vmem:[#allocation7 + $0x54] ss:$8 sps:$4 sm:$0xff]  }
 0x118   :  { %1342 = vmatprep.subr.bf16.mxu0 %v3022_v44  ;;  %1465 = vmatprep.subr.bf16.mxu1 %v3025_v45  ;;  %v3101_v44 = vld [vmem:[#allocation7 + $0x50] ss:$8 sps:$4 sm:$0xff]   ;;  %v3106_v45 = vld [vmem:[#allocation7 + $0x64] ss:$8 sps:$4 sm:$0xff]  }
 0x11b   :  { %1343 = vmatpush1.bf16.msra.mxu0 %v3020_v46  ;;  %1466 = vmatpush1.bf16.msra.mxu1 %v3023_v47  ;;  %v3104_v46 = vld [vmem:[#allocation7 + $0x60] ss:$8 sps:$4 sm:$0xff]   ;;  %v3109_v47 = vld [vmem:[#allocation7 + $0x74] ss:$8 sps:$4 sm:$0xff]  }
 0x11c   :  { %1344 = vmatprep.subr.bf16.mxu0 %v3028_v49  ;;  %1467 = vmatprep.subr.bf16.mxu1 %v3031_v50  ;;  %v3107_v49 = vld [vmem:[#allocation7 + $0x70] ss:$8 sps:$4 sm:$0xff]   ;;  %v3112_v50 = vld [vmem:[#allocation7 + $0x84] ss:$8 sps:$4 sm:$0xff]  }
 0x11f   :  { %1345 = vmatpush1.bf16.msra.mxu0 %v3026_v53  ;;  %1468 = vmatpush1.bf16.msra.mxu1 %v3029_v55  ;;  %v3110_v53 = vld [vmem:[#allocation7 + $0x80] ss:$8 sps:$4 sm:$0xff]   ;;  %v3115_v55 = vld [vmem:[#allocation7 + $0x94] ss:$8 sps:$4 sm:$0xff]  }
 0x120   :  { %1346 = vmatprep.subr.bf16.mxu0 %v3034_v59  ;;  %1469 = vmatprep.subr.bf16.mxu1 %v3037_v60  ;;  %v3113_v59 = vld [vmem:[#allocation7 + $0x90] ss:$8 sps:$4 sm:$0xff]   ;;  %v3118_v60 = vld [vmem:[#allocation7 + $0xa4] ss:$8 sps:$4 sm:$0xff]  }
 0x123   :  { %1347 = vmatpush1.bf16.msra.mxu0 %v3032_v61  ;;  %1470 = vmatpush1.bf16.msra.mxu1 %v3035_v62  ;;  %v3116_v61 = vld [vmem:[#allocation7 + $0xa0] ss:$8 sps:$4 sm:$0xff]   ;;  %v3121_v62 = vld [vmem:[#allocation7 + $0xb4] ss:$8 sps:$4 sm:$0xff]  }
 0x124   :  { %1357 = vmatprep.subr.bf16.mxu0 %v3040_v63  ;;  %1480 = vmatprep.subr.bf16.mxu1 %v3043_v0  ;;  %v3119_v63 = vld [vmem:[#allocation7 + $0xb0] ss:$8 sps:$4 sm:$0xff]   ;;  %v3124_v0 = vld [vmem:[#allocation7 + $0xc4] ss:$8 sps:$4 sm:$0xff]  }
 0x126   :  { %1349 = vmatmul.mubr.bf16.vlgmr.msra.gmra.mrb[0].mxu0 %v290_v3  ;;  %1472 = vmatmul.mubr.bf16.vlgmr.msra.gmra.mrb[0].mxu1 %v290_v3  ;;  %v3125_v3 = vld [vmem:[#allocation7 + $0xd0] ss:$8 sps:$4 sm:$0xff]  }
 0x127   :  { %1358 = vmatpush1.bf16.msra.mxu0 %v3038_v1  ;;  %1481 = vmatpush1.bf16.msra.mxu1 %v3041_v2  ;;  %v3122_v1 = vld [vmem:[#allocation7 + $0xc0] ss:$8 sps:$4 sm:$0xff]   ;;  %v3127_v2 = vld [vmem:[#allocation7 + $0xd4] ss:$8 sps:$4 sm:$0xff]  }
 0x128   :  { %1359 = vmatprep.subr.bf16.mxu0 %v3046_v4  ;;  %1482 = vmatprep.subr.bf16.mxu1 %v3049_v5  ;;  %v3130_v4 = vld [vmem:[#allocation7 + $0xe4] ss:$8 sps:$4 sm:$0xff]   ;;  %v3128_v5 = vld [vmem:[#allocation7 + $0xe0] ss:$8 sps:$4 sm:$0xff]  }
 0x129   :  { %1389 = vmatprep.mubr.bf16.mxu0 %v3440_v12  ;;  %1512 = vmatprep.mubr.bf16.mxu1 %v3440_v12  ;;  %v3185_v12 = vld [vmem:[%s3843_s7 + $0x8] sm:$0xff]  }
 0x12b   :  { %1360 = vmatpush1.bf16.msra.mxu0 %v3044_v6  ;;  %1483 = vmatpush1.bf16.msra.mxu1 %v3047_v7  ;;  %v3133_v6 = vld [vmem:[#allocation7 + $0xf4] ss:$8 sps:$4 sm:$0xff]   ;;  %v3131_v7 = vld [vmem:[#allocation7 + $0xf0] ss:$8 sps:$4 sm:$0xff]  }
 0x12c   :  { %1361 = vmatprep.subr.bf16.mxu0 %v3052_v8  ;;  %1484 = vmatprep.subr.bf16.mxu1 %v3055_v9  ;;  %v3136_v8 = vld [vmem:[#allocation7 + $0x104] ss:$8 sps:$4 sm:$0xff]   ;;  %v3182_v9 = vld [vmem:[%s3843_s7 + $0x40] sm:$0xff]  }
 0x12f   :  { %1362 = vmatpush1.bf16.msra.mxu0 %v3050_v10  ;;  %1485 = vmatpush1.bf16.msra.mxu1 %v3053_v11  ;;  %v3183_v10 = vld [vmem:[%s3843_s7] sm:$0xff]   ;;  %v3184_v11 = vld [vmem:[%s3843_s7 + $0x48] sm:$0xff]  }
 0x130   :  { %1363 = vmatprep.subr.bf16.mxu0 %v3058_v35  ;;  %1486 = vmatprep.subr.bf16.mxu1 %v3061_v13  ;;  %v3186_v35 = vld [vmem:[%s3843_s7 + $0x50] sm:$0xff]  }
 0x131   :  { %v3187_v13 = vld [vmem:[%s3843_s7 + $0x10] sm:$0xff]  }
 0x133   :  { %1364 = vmatpush1.bf16.msra.mxu0 %v3056_v14  ;;  %1487 = vmatpush1.bf16.msra.mxu1 %v3059_v15  ;;  %v3188_v14 = vld [vmem:[%s3843_s7 + $0x58] sm:$0xff]  }
 0x134   :  { %1365 = vmatprep.subr.bf16.mxu0 %v3064_v16  ;;  %1488 = vmatprep.subr.bf16.mxu1 %v3067_v17  ;;  %v3189_v15 = vld [vmem:[%s3843_s7 + $0x18] sm:$0xff]   ;;  %v3190_v16 = vld [vmem:[%s3843_s7 + $0x60] sm:$0xff]  }
 0x135   :  { %v3191_v17 = vld [vmem:[%s3843_s7 + $0x20] sm:$0xff]  }
 0x137   :  { %1366 = vmatpush1.bf16.msra.mxu0 %v3062_v18  ;;  %1489 = vmatpush1.bf16.msra.mxu1 %v3065_v19  ;;  %v3192_v18 = vld [vmem:[%s3843_s7 + $0x68] sm:$0xff]  }
 0x138   :  { %1367 = vmatprep.subr.bf16.mxu0 %v3070_v20  ;;  %1490 = vmatprep.subr.bf16.mxu1 %v3073_v21  ;;  %v3193_v19 = vld [vmem:[%s3843_s7 + $0x28] sm:$0xff]   ;;  %v453_v20 = vld [vmem:[%s3840_s4] sm:$0xf] }
 0x139   :  { %v458_v21 = vrot.slane %v453_v20, %v3645_v48 }
 0x13b   :  { %1368 = vmatpush1.bf16.msra.mxu0 %v3068_v22  ;;  %1491 = vmatpush1.bf16.msra.mxu1 %v3071_v23  ;;  %v466_v22 = vrot.slane %v453_v20, %v3651_v52  ;;  %v462_v23 = vrot.slane %v453_v20, %v3648_v51 }
 0x13c   :  { %1369 = vmatprep.subr.bf16.mxu0 %v3076_v24  ;;  %1492 = vmatprep.subr.bf16.mxu1 %v3079_v25  ;;  %v470_v24 = vrot.slane %v453_v20, %v3654_v54  ;;  %v3195_v20 = vld [vmem:[%s3843_s7 + $0x30] sm:$0xff]  }
 0x13f   :  { %1370 = vmatpush1.bf16.msra.mxu0 %v3074_v26  ;;  %1493 = vmatpush1.bf16.msra.mxu1 %v3077_v27 }
 0x140   :  { %1371 = vmatprep.subr.bf16.mxu0 %v3082_v28  ;;  %1494 = vmatprep.subr.bf16.mxu1 %v3085_v29 }
 0x143   :  { %1372 = vmatpush1.bf16.msra.mxu0 %v3080_v30  ;;  %1495 = vmatpush1.bf16.msra.mxu1 %v3083_v31 }
 0x144   :  { %1925 = vmatprep.subr.bf16.mxu0 %v3088_v32  ;;  %2721 = vmatprep.subr.bf16.mxu1 %v3182_v9  ;;  %v3169_v9 = vld [vmem:[#allocation7 + $0x1b4] ss:$8 sps:$4 sm:$0xff]  }
 0x146   :  { %1390 = vmatmul.mubr.bf16.vlgmr.msra.gmra.mrb[0].mxu0 %v292_v33  ;;  %1513 = vmatmul.mubr.bf16.vlgmr.msra.gmra.mrb[0].mxu1 %v292_v33 }
 0x147   :  { %1926 = vmatpush1.bf16.msra.mxu0 %v3086_v34  ;;  %2722 = vmatpush3.bf16.msra.mxu1 %v3183_v10  ;;  %v3167_v10 = vld [vmem:[#allocation7 + $0x1b0] ss:$8 sps:$4 sm:$0xff]  }
 0x148   :  { %1927 = vmatprep.subr.bf16.mxu0 %v3091_v36  ;;  %2723 = vmatprep.subr.bf16.mxu1 %v3184_v11  ;;  %v3172_v11 = vld [vmem:[#allocation7 + $0x1c4] ss:$8 sps:$4 sm:$0xff]  }
 0x14b   :  { %1928 = vmatpush1.bf16.msra.mxu0 %v3089_v37  ;;  %2724 = vmatpush3.bf16.msra.mxu1 %v3185_v12  ;;  %v3170_v12 = vld [vmem:[#allocation7 + $0x1c0] ss:$8 sps:$4 sm:$0xff]  }
 0x14c   :  { %1929 = vmatprep.subr.bf16.mxu0 %v3094_v56  ;;  %2725 = vmatprep.subr.bf16.mxu1 %v3186_v35  ;;  %v3175_v35 = vld [vmem:[#allocation7 + $0x1d4] ss:$8 sps:$4 sm:$0xff]  }
 0x14f   :  { %1930 = vmatpush1.bf16.msra.mxu0 %v3092_v58  ;;  %2726 = vmatpush3.bf16.msra.mxu1 %v3187_v13  ;;  %v3173_v13 = vld [vmem:[#allocation7 + $0x1d0] ss:$8 sps:$4 sm:$0xff]  }
 0x150   :  { %1931 = vmatprep.subr.bf16.mxu0 %v3097_v38  ;;  %2727 = vmatprep.subr.bf16.mxu1 %v3188_v14  ;;  %v3178_v14 = vld [vmem:[#allocation7 + $0x1e4] ss:$8 sps:$4 sm:$0xff]  }
 0x153   :  { %1932 = vmatpush1.bf16.msra.mxu0 %v3095_v39  ;;  %2728 = vmatpush3.bf16.msra.mxu1 %v3189_v15  ;;  %v3176_v15 = vld [vmem:[#allocation7 + $0x1e0] ss:$8 sps:$4 sm:$0xff]  }
 0x154   :  { %1933 = vmatprep.subr.bf16.mxu0 %v3100_v41  ;;  %2729 = vmatprep.subr.bf16.mxu1 %v3190_v16  ;;  %v3134_v41 = vld [vmem:[#allocation7 + $0x100] ss:$8 sps:$4 sm:$0xff]   ;;  %v3181_v16 = vld [vmem:[#allocation7 + $0x1f4] ss:$8 sps:$4 sm:$0xff]  }
 0x157   :  { %1934 = vmatpush1.bf16.msra.mxu0 %v3098_v42  ;;  %2730 = vmatpush3.bf16.msra.mxu1 %v3191_v17  ;;  %v3179_v17 = vld [vmem:[#allocation7 + $0x1f0] ss:$8 sps:$4 sm:$0xff]  }
 0x158   :  { %1935 = vmatprep.subr.bf16.mxu0 %v3103_v43  ;;  %2731 = vmatprep.subr.bf16.mxu1 %v3192_v18  ;;  %v3139_v43 = vld [vmem:[#allocation7 + $0x114] ss:$8 sps:$4 sm:$0xff]  }
 0x15b   :  { %1936 = vmatpush1.bf16.msra.mxu0 %v3101_v44  ;;  %2732 = vmatpush3.bf16.msra.mxu1 %v3193_v19  ;;  %v3194_v19 = vld [vmem:[%s3843_s7 + $0x70] sm:$0xff]  }
 0x15c   :  { %1937 = vmatprep.subr.bf16.mxu0 %v3106_v45  ;;  %2733 = vmatprep.subr.bf16.mxu1 %v3194_v19 }
 0x15f   :  { %1938 = vmatpush1.bf16.msra.mxu0 %v3104_v46  ;;  %2734 = vmatpush3.bf16.msra.mxu1 %v3195_v20 }
 0x160   :  { %1939 = vmatprep.subr.bf16.mxu0 %v3109_v47 }
 0x163   :  { %1940 = vmatpush1.bf16.msra.mxu0 %v3107_v49  ;;  %v3137_v49 = vld [vmem:[#allocation7 + $0x110] ss:$8 sps:$4 sm:$0xff]  }
 0x164   :  { %1941 = vmatprep.subr.bf16.mxu0 %v3112_v50  ;;  %v3142_v50 = vld [vmem:[#allocation7 + $0x124] ss:$8 sps:$4 sm:$0xff]  }
 0x167   :  { %1942 = vmatpush1.bf16.msra.mxu0 %v3110_v53  ;;  %v3140_v53 = vld [vmem:[#allocation7 + $0x120] ss:$8 sps:$4 sm:$0xff]  }
 0x168   :  { %1943 = vmatprep.subr.bf16.mxu0 %v3115_v55  ;;  %v3145_v55 = vld [vmem:[#allocation7 + $0x134] ss:$8 sps:$4 sm:$0xff]  }
 0x16b   :  { %1944 = vmatpush1.bf16.msra.mxu0 %v3113_v59  ;;  %v3143_v59 = vld [vmem:[#allocation7 + $0x130] ss:$8 sps:$4 sm:$0xff]  }
 0x16c   :  { %1945 = vmatprep.subr.bf16.mxu0 %v3118_v60  ;;  %v3146_v60 = vld [vmem:[#allocation7 + $0x140] ss:$8 sps:$4 sm:$0xff]  }
 0x16f   :  { %1946 = vmatpush1.bf16.msra.mxu0 %v3116_v61  ;;  %v3151_v61 = vld [vmem:[#allocation7 + $0x154] ss:$8 sps:$4 sm:$0xff]  }
 0x170   :  { %1947 = vmatprep.subr.bf16.mxu0 %v3121_v62  ;;  %v3149_v62 = vld [vmem:[#allocation7 + $0x150] ss:$8 sps:$4 sm:$0xff]  }
 0x173   :  { %1948 = vmatpush1.bf16.msra.mxu0 %v3119_v63  ;;  %v3154_v63 = vld [vmem:[#allocation7 + $0x164] ss:$8 sps:$4 sm:$0xff]  }
 0x174   :  { %1949 = vmatprep.subr.bf16.mxu0 %v3124_v0  ;;  %v3152_v0 = vld [vmem:[#allocation7 + $0x160] ss:$8 sps:$4 sm:$0xff]  }
 0x177   :  { %1950 = vmatpush1.bf16.msra.mxu0 %v3122_v1  ;;  %v3157_v1 = vld [vmem:[#allocation7 + $0x174] ss:$8 sps:$4 sm:$0xff]  }
 0x178   :  { %1951 = vmatprep.subr.bf16.mxu0 %v3127_v2  ;;  %v3155_v2 = vld [vmem:[#allocation7 + $0x170] ss:$8 sps:$4 sm:$0xff]  }
 0x17b   :  { %1952 = vmatpush1.bf16.msra.mxu0 %v3125_v3  ;;  %v3160_v3 = vld [vmem:[#allocation7 + $0x184] ss:$8 sps:$4 sm:$0xff]  }
 0x17c   :  { %1953 = vmatprep.subr.bf16.mxu0 %v3130_v4  ;;  %v3158_v4 = vld [vmem:[#allocation7 + $0x180] ss:$8 sps:$4 sm:$0xff]  }
 0x17f   :  { %1954 = vmatpush1.bf16.msra.mxu0 %v3128_v5  ;;  %v3163_v5 = vld [vmem:[#allocation7 + $0x194] ss:$8 sps:$4 sm:$0xff]  }
 0x180   :  { %1955 = vmatprep.subr.bf16.mxu0 %v3133_v6  ;;  %v3161_v6 = vld [vmem:[#allocation7 + $0x190] ss:$8 sps:$4 sm:$0xff]  }
 0x183   :  { %1956 = vmatpush1.bf16.msra.mxu0 %v3131_v7  ;;  %v3166_v7 = vld [vmem:[#allocation7 + $0x1a4] ss:$8 sps:$4 sm:$0xff]  }
 0x184   :  { %1966 = vmatprep.subr.bf16.mxu0 %v3136_v8  ;;  %v3164_v8 = vld [vmem:[#allocation7 + $0x1a0] ss:$8 sps:$4 sm:$0xff]  }
 0x219   :  { %v1391_v25 = vpop.f32.mrb[0].mxu0  ;;  %v1514_v26 = vpop.f32.mrb[0].mxu1 }
 0x21a   :  { %v2801_v27 = vadd.f32 %v1391_v25, %v458_v21  ;;  %v2803_v28 = vadd.f32 %v1514_v26, %v466_v22  ;;  %v1393_v29 = vpop.f32.mrb[1].mxu0  ;;  %v1516_v30 = vpop.f32.mrb[1].mxu1  ;;  %v3196_v21 = vld [vmem:[%s3843_s7 + $0x78] sm:$0xff]  }
 0x21b   :  { %v2802_v31 = vadd.f32 %v1393_v29, %v462_v23  ;;  %v2804_v40 = vadd.f32 %v1516_v30, %v470_v24  ;;  %v1395_v32 = vpop.f32.mrb[2].mxu0  ;;  %v1518_v33 = vpop.f32.mrb[2].mxu1  ;;  %v3197_v22 = vld [vmem:[%s3843_s7 + $0x38] sm:$0xff]   ;;  %2735 = vmatprep.subr.bf16.mxu1 %v3196_v21  ;;  %v3441_v23 = vmov 0.0   ;;  %v1593_v24 = vld [vmem:[#allocation9] sm:$0x3] }
 0x21c   :  { %v1521_v34 = vmax.f32 %v2801_v27, 0.0  ;;  %v3756_v36 = vmax.f32 %v2803_v28, 0.0  ;;  %v1396_v37 = vpop.f32.mrb[3].mxu0  ;;  %v1519_v56 = vpop.f32.mrb[3].mxu1  ;;  %2736 = vmatpush3.bf16.msra.mxu1 %v3197_v22  ;;  %v1598_v25 = vrot.slane %v1593_v24, %v3645_v48  ;;  %v1602_v26 = vrot.slane %v1593_v24, %v3648_v51  ;;  %v3199_v48 = vld [vmem:[%s3845_s9 + $0x8] sm:$0xff]   ;;  %v3200_v51 = vld [vmem:[%s3845_s9 + $0x10] sm:$0xff]  }
 0x21d   :  { %v1522_v52 = vmax.f32 %v2802_v31, 0.0  ;;  %v1524_v58 = vmax.f32 %v2804_v40, 0.0  ;;  %2761 = vmatprep.subr.bf16.mxu1 %v3441_v23  ;;  %v3198_v37 = vld [vmem:[%s3845_s9] sm:$0xff]  }
 0x21e   :  { %v1525_v42 = vpack.c.bf16 %v1521_v34, %v1521_v34  ;;  %v1527_v18 = vpack.c.bf16 %v3756_v36, %v3756_v36 }
 0x21f   :  { %v1526_v38 = vpack.c.bf16 %v1522_v52, %v1522_v52  ;;  %v2418_v39 = vcombine.low %v1521_v34, %v1522_v52  ;;  %v2419_v54 = vcombine.low %v3756_v36, %v1524_v58  ;;  %v1528_v45 = vpack.c.bf16 %v1524_v58, %v1524_v58  ;;  %v3201_v52 = vld [vmem:[%s3845_s9 + $0x18] sm:$0xff]   ;;  %v3202_v58 = vld [vmem:[%s3845_s9 + $0x20] sm:$0xff]  }
 0x221   :  { %v2426_v44 = vrot.slane %v2418_v39, %v3659_v57  ;;  %v2433_v46 = vrot.slane %v2419_v54, %v3659_v57  ;;  %1957 = vmatprep.mubr.bf16.mxu0 %v1526_v38  ;;  %v3148_v57 = vld [vmem:[#allocation7 + $0x144] ss:$8 sps:$4 sm:$0xff]   ;;  %v3203_v38 = vld [vmem:[%s3845_s9 + $0x28] sm:$0xff]  }
 0x222   :  { %1958 = vmatmul.mubr.bf16.vlgmr.msra.gmra.mrb[4].mxu0 %v1525_v42  ;;  %v3204_v39 = vld [vmem:[%s3845_s9 + $0x30] sm:$0xff]   ;;  %v3205_v54 = vld [vmem:[%s3845_s9 + $0x38] sm:$0xff]   ;;  %v2685_v42 = vld [vmem:[#allocation10] ss:$0 sm:$0xff] }
 0x223   :  { %v2434_v47 = vcombine.low %v2426_v44, %v2433_v46  ;;  %1967 = vmatpush1.bf16.msra.mxu0 %v3134_v41  ;;  %1998 = vmatprep.mubr.bf16.mxu0 %v1528_v45 }
 0x224   :  { %1968 = vmatprep.subr.bf16.mxu0 %v3139_v43 }
 0x225   :  { %2436 = vst [vmem:[%s3849_s13 + $0xa] sm:$0xff] %v2434_v47 }
 0x227   :  { %1969 = vmatpush1.bf16.msra.mxu0 %v3137_v49 }
 0x228   :  { %1970 = vmatprep.subr.bf16.mxu0 %v3142_v50  ;;  %v3206_v50 = vld [vmem:[#allocation13] sm:$0xff]  }
 0x22b   :  { %1971 = vmatpush1.bf16.msra.mxu0 %v3140_v53 }
 0x22c   :  { %1972 = vmatprep.subr.bf16.mxu0 %v3145_v55  ;;  %v3207_v55 = vld [vmem:[#allocation13 + $0x8] sm:$0xff]  }
 0x22f   :  { %1973 = vmatpush1.bf16.msra.mxu0 %v3143_v59  ;;  %v3208_v59 = vld [vmem:[#allocation13 + $0x10] sm:$0xff]  }
 0x230   :  { %1974 = vmatprep.subr.bf16.mxu0 %v3148_v57  ;;  %v3209_v57 = vld [vmem:[#allocation13 + $0x18] sm:$0xff]  }
 0x233   :  { %1975 = vmatpush1.bf16.msra.mxu0 %v3146_v60  ;;  %v3210_v60 = vld [vmem:[#allocation13 + $0x20] sm:$0xff]  }
 0x234   :  { %1976 = vmatprep.subr.bf16.mxu0 %v3151_v61  ;;  %v3211_v61 = vld [vmem:[#allocation13 + $0x28] sm:$0xff]  }
 0x237   :  { %1977 = vmatpush1.bf16.msra.mxu0 %v3149_v62  ;;  %v3212_v62 = vld [vmem:[#allocation13 + $0x30] sm:$0xff]  }
 0x238   :  { %1978 = vmatprep.subr.bf16.mxu0 %v3154_v63  ;;  %v3213_v63 = vld [vmem:[#allocation13 + $0x38] sm:$0xff]  }
 0x23b   :  { %1979 = vmatpush1.bf16.msra.mxu0 %v3152_v0  ;;  %v2702_v0 = vld [vmem:[#allocation12] ss:$0 sm:$0xff] }
 0x23c   :  { %1980 = vmatprep.subr.bf16.mxu0 %v3157_v1 }
 0x23f   :  { %1981 = vmatpush1.bf16.msra.mxu0 %v3155_v2 }
 0x240   :  { %1982 = vmatprep.subr.bf16.mxu0 %v3160_v3 }
 0x243   :  { %1983 = vmatpush1.bf16.msra.mxu0 %v3158_v4 }
 0x244   :  { %1984 = vmatprep.subr.bf16.mxu0 %v3163_v5 }
 0x247   :  { %1985 = vmatpush1.bf16.msra.mxu0 %v3161_v6 }
 0x248   :  { %1986 = vmatprep.subr.bf16.mxu0 %v3166_v7 }
 0x24b   :  { %1987 = vmatpush1.bf16.msra.mxu0 %v3164_v8  ;;  %v2711_v8 = vld [vmem:[#allocation15] ss:$0 sm:$0xff] }
 0x24c   :  { %1988 = vmatprep.subr.bf16.mxu0 %v3169_v9 }
 0x24f   :  { %1989 = vmatpush1.bf16.msra.mxu0 %v3167_v10 }
 0x250   :  { %1990 = vmatprep.subr.bf16.mxu0 %v3172_v11 }
 0x253   :  { %1991 = vmatpush1.bf16.msra.mxu0 %v3170_v12 }
 0x254   :  { %1992 = vmatprep.subr.bf16.mxu0 %v3175_v35 }
 0x257   :  { %1993 = vmatpush1.bf16.msra.mxu0 %v3173_v13 }
 0x258   :  { %1994 = vmatprep.subr.bf16.mxu0 %v3178_v14 }
 0x25b   :  { %1995 = vmatpush1.bf16.msra.mxu0 %v3176_v15 }
 0x25c   :  { %1996 = vmatprep.subr.bf16.mxu0 %v3181_v16 }
 0x25f   :  { %1997 = vmatpush1.bf16.msra.mxu0 %v3179_v17 }
 0x262   :  { %1999 = vmatmul.mubr.bf16.vlgmr.msra.gmra.mrb[4].mxu0 %v1527_v18 }
 0x335   :  { %v2000_v27 = vpop.f32.mrb[4].mxu0 }
 0x336   :  { %v2805_v28 = vadd.f32 %v2000_v27, %v1598_v25  ;;  %v2002_v29 = vpop.f32.mrb[5].mxu0 }
 0x337   :  { %v2806_v30 = vadd.f32 %v2002_v29, %v1602_v26  ;;  %v2004_v31 = vpop.f32.mrb[6].mxu0 }
 0x338   :  { %v2007_v40 = vmax.f32 %v2805_v28, 0.0  ;;  %v2005_v32 = vpop.f32.mrb[7].mxu0 }
 0x339   :  { %v2008_v33 = vmax.f32 %v2806_v30, 0.0 }
 0x33a   :  { %v2009_v56 = vpack.c.bf16 %v2007_v40, %v2007_v40 }
 0x33b   :  { %v2010_v34 = vpack.c.bf16 %v2008_v33, %v2008_v33  ;;  %v2439_v36 = vcombine.low %v2007_v40, %v2008_v33 }
 0x33d   :  { %2720 = vst.sshfl [vmem:[%s3849_s13 + $0x12] sm:$0x33 pattern:$0x76325410] %v2439_v36  ;;  %2178 = vmatprep.mubr.bf16.mxu1 %v2010_v34 }
 0x33e   :  { %2179 = vmatmul.mubr.bf16.vlgmr.msra.gmra.mrb[4].mxu1 %v2009_v56 }
 0x33f   :  { %2762 = vmatpush3.bf16.msra.mxu1 %v3198_v37  ;;  %2777 = vmatprep.mubr.msk.bf16.mxu1 %vm3442_vm0, %v3441_v23 }
 0x340   :  { %2763 = vmatprep.subr.bf16.mxu1 %v3441_v23 }
 0x343   :  { %2764 = vmatpush3.bf16.msra.mxu1 %v3199_v48 }
 0x344   :  { %2765 = vmatprep.subr.bf16.mxu1 %v3441_v23 }
 0x347   :  { %2766 = vmatpush3.bf16.msra.mxu1 %v3200_v51 }
 0x348   :  { %2767 = vmatprep.subr.bf16.mxu1 %v3441_v23 }
 0x34b   :  { %2768 = vmatpush3.bf16.msra.mxu1 %v3201_v52 }
 0x34c   :  { %2769 = vmatprep.subr.bf16.mxu1 %v3441_v23 }
 0x34f   :  { %2770 = vmatpush3.bf16.msra.mxu1 %v3202_v58 }
 0x350   :  { %2771 = vmatprep.subr.bf16.mxu1 %v3441_v23 }
 0x353   :  { %2772 = vmatpush3.bf16.msra.mxu1 %v3203_v38 }
 0x354   :  { %2773 = vmatprep.subr.bf16.mxu1 %v3441_v23 }
 0x357   :  { %2774 = vmatpush3.bf16.msra.mxu1 %v3204_v39 }
 0x358   :  { %2775 = vmatprep.subr.bf16.mxu1 %v3441_v23 }
 0x35b   :  { %2776 = vmatpush3.bf16.msra.mxu1 %v3205_v54 }
 0x35c   :  { %2781 = vmatprep.subr.bf16.mxu1 %v3441_v23 }
 0x411   :  { %v2737_v41 = vpop.f32.mrb[4].mxu1 }
 0x412   :  { %v2738_v43 = vpop.f32.mrb[5].mxu1 }
 0x413   :  { %v2739_v44 = vadd.f32 %v2738_v43, %v2737_v41  ;;  %v2740_v45 = vpop.f32.mrb[6].mxu1 }
 0x414   :  { %v2741_v46 = vpop.f32.mrb[7].mxu1 }
 0x415   :  { %v2181_v47 = vadd.f32 %v2739_v44, %v2685_v42 }
 0x417   :  { %v2186_v49 = vmax.f32 %v2181_v47, 0.0 }
 0x419   :  { %v2187_v53 = vpack.c.bf16 %v2186_v49, %v2186_v49  ;;  %2449 = vst [vmem:[%s3849_s13 + $0x16] sm:$0x3] %v2186_v49 }
 0x41b   :  { %2778 = vmatmul.mubr.bf16.vlgmr.msra.gmra.mrb[8].mxu1 %v2187_v53 }
 0x41c   :  { %2782 = vmatpush3.bf16.msra.mxu1 %v3206_v50  ;;  %2797 = vmatprep.mubr.msk.bf16.mxu1 %vm3442_vm0, %v3441_v23 }
 0x41d   :  { %2783 = vmatprep.subr.bf16.mxu1 %v3441_v23 }
 0x420   :  { %2784 = vmatpush3.bf16.msra.mxu1 %v3207_v55 }
 0x421   :  { %2785 = vmatprep.subr.bf16.mxu1 %v3441_v23 }
 0x424   :  { %2786 = vmatpush3.bf16.msra.mxu1 %v3208_v59 }
 0x425   :  { %2787 = vmatprep.subr.bf16.mxu1 %v3441_v23 }
 0x428   :  { %2788 = vmatpush3.bf16.msra.mxu1 %v3209_v57 }
 0x429   :  { %2789 = vmatprep.subr.bf16.mxu1 %v3441_v23 }
 0x42c   :  { %2790 = vmatpush3.bf16.msra.mxu1 %v3210_v60 }
 0x42d   :  { %2791 = vmatprep.subr.bf16.mxu1 %v3441_v23 }
 0x430   :  { %2792 = vmatpush3.bf16.msra.mxu1 %v3211_v61 }
 0x431   :  { %2793 = vmatprep.subr.bf16.mxu1 %v3441_v23 }
 0x434   :  { %2794 = vmatpush3.bf16.msra.mxu1 %v3212_v62 }
 0x435   :  { %2795 = vmatprep.subr.bf16.mxu1 %v3441_v23 }
 0x438   :  { %2796 = vmatpush3.bf16.msra.mxu1 %v3213_v63 }
 0x4ee   :  { %v2293_v1 = vpop.f32.mrb[8].mxu1 }
 0x4ef   :  { %v2294_v2 = vadd.f32 %v2702_v0, %v2293_v1  ;;  %v2779_v3 = vpop.f32.mrb[9].mxu1 }
 0x4f0   :  { %v2296_v4 = vpop.f32.mrb[10].mxu1 }
 0x4f1   :  { %3214 = vtanh.f32 %v2294_v2  ;;  %v2780_v5 = vpop.f32.mrb[11].mxu1 }
 0x4fb   :  { %v3215_v6 = vpop.eup %3214 }
 0x4fc   :  { %2450 = vst [vmem:[%s3849_s13 + $0x18] sm:$0x3] %v3215_v6  ;;  %v2300_v7 = vpack.c.bf16 %v3215_v6, %v3215_v6 }
 0x4fe   :  { %2798 = vmatmul.mubr.bf16.vlgmr.msra.gmra.mrb[12].mxu1 %v2300_v7 }
 0x5d1   :  { %v2406_v9 = vpop.f32.mrb[12].mxu1 }
 0x5d2   :  { %v2407_v10 = vadd.f32 %v2711_v8, %v2406_v9  ;;  %v2799_v11 = vpop.f32.mrb[13].mxu1 }
 0x5d3   :  { %v2409_v12 = vpop.f32.mrb[14].mxu1 }
 0x5d4   :  { %2451 = vst [vmem:[%s3849_s13 + $0x1a] sm:$0x3] %v2407_v10  ;;  %v2800_v35 = vpop.f32.mrb[15].mxu1 }
 0x5d5   :  { %2456 = vsyncpa [#allocation3], 1 }
 0x5d6   :  { %2457 = vsyncpa [#allocation5], 1 }
 0x5d7   :  { %2458 = vsyncpa [#allocation8], 1 }
 0x5d8   :  { %2459 = vsyncpa [#allocation11], 1 }
 0x5d9   :  { %2460 = vsyncpa [#allocation14], 1 }

</bundles_post_ra>
